<compile_context>
chip_gen: v6e
topology: v6e:2x2x1
jax: 0.10.0
libtpu: 0.0.40
codegen_flags: <defaults>
</compile_context>

<pallas_src>
from functools import partial

import numpy as np

import jax
import jax.numpy as jnp
from jax.experimental import pallas as pl
from jax.experimental.pallas import tpu as pltpu


def _cnn_kernel(tok_ref, wf_ref, bf_ref, mask_ref, wl_ref, bl_ref, out_ref,
                *, kmax, seq_len, bblk):
    L = seq_len
    N = bblk * L                       # flattened (batch*time) rows per block
    V = wf_ref.shape[1]
    C3 = wf_ref.shape[2]

    # ---- one-hot of the token ids: a single compare, V pads to one lane tile.
    tok = tok_ref[...]                                           # (N, 1) int32
    vocab_iota = jax.lax.broadcasted_iota(jnp.int32, (N, V), 1)
    onehot = (vocab_iota == tok).astype(jnp.float32)             # (N, V)

    # ---- embedding + all conv branches fused:  acc[t] = sum_j P_j[tok[t+j]].
    # P_j = emb @ W_tap_j was precomputed in the wrapper (wf_ref[j]); the time
    # shift is an XLU sublane roll of the one-hot matrix. Rows that wrap or
    # cross a sample boundary only reach time positions the validity mask
    # zeroes out below.
    acc = jnp.dot(onehot, wf_ref[0], preferred_element_type=jnp.float32)
    for j in range(1, kmax):
        oh_j = pltpu.roll(onehot, shift=N - j, axis=0)           # row t -> t+j
        acc = acc + jnp.dot(oh_j, wf_ref[j],
                            preferred_element_type=jnp.float32)
    acc = acc + bf_ref[...]                                      # (N, 3C)

    # ---- ReLU, constant per-branch validity mask, max-pool over time.
    act = jnp.maximum(acc, 0.0).reshape(bblk, L, C3)
    act = act * mask_ref[...]             # (L, 3C) 0/1, broadcast over batch
    feat = jnp.max(act, axis=1)                                  # (bblk, 3C)

    # ---- Dropout(eval)=identity; fused Linear, 128-lane-dense store.
    out_ref[...] = jnp.dot(feat, wl_ref[...],
                           preferred_element_type=jnp.float32) + bl_ref[...]


def _default_num_blocks():
    """Grid steps: 2 on dual-TensorCore v7x, 1 on single-TC v5e/v6e."""
    try:
        kind = jax.devices()[0].device_kind.lower()
    except Exception:
        return 1
    return 2 if ("v7" in kind or "7x" in kind) else 1


def cnn_forward(tokens, emb_table, conv_params, w_label, b_label,
                kernel_heights=(3, 4, 5), *, block_b=None, out_pad=128):
    """tokens: (B, L) int32. emb_table: (V, E) f32.
    conv_params: list of (w, b) in PyTorch Conv2d layout, w: (C, 1, kh, E), b: (C,).
    w_label: (8, 3C), b_label: (8,) in PyTorch Linear layout. Returns (B, 8)."""
    B, L = tokens.shape
    V, E = emb_table.shape
    C = conv_params[0][0].shape[0]
    n_br = len(kernel_heights)
    kmax = max(kernel_heights)
    C3 = n_br * C
    out_dim = w_label.shape[0]
    assert L >= kmax

    emb = emb_table.astype(jnp.float32)

    # Fuse Embedding into the conv taps: wf[j] = emb @ W_tap_j, shape (V, 3C).
    # Branch i occupies columns [i*C, (i+1)*C); taps j >= kh_i stay zero.
    wf = jnp.zeros((kmax, V, C3), jnp.float32)
    bf = jnp.zeros((1, C3), jnp.float32)
    for i, ((w, b), kh) in enumerate(zip(conv_params, kernel_heights)):
        w = w.astype(jnp.float32)
        for j in range(kh):
            wf = wf.at[j, :, i * C:(i + 1) * C].set(emb @ w[:, 0, j, :].T)
        bf = bf.at[0, i * C:(i + 1) * C].set(b.astype(jnp.float32))

    # Trace-time constant validity mask: 1 where the conv position is valid.
    mask_np = np.zeros((L, C3), np.float32)
    for i, kh in enumerate(kernel_heights):
        mask_np[: L - kh + 1, i * C:(i + 1) * C] = 1.0
    mask = jnp.asarray(mask_np)

    # Final Linear, zero-padded to 128 output lanes for an unmasked store.
    wl = jnp.zeros((C3, out_pad), jnp.float32).at[:, :out_dim].set(
        w_label.astype(jnp.float32).T)
    bl = jnp.zeros((1, out_pad), jnp.float32).at[0, :out_dim].set(
        b_label.astype(jnp.float32))

    # Per-generation grid sizing (grid=1 on 1-TC chips, grid=2 on v7x).
    if block_b is None:
        nblk = max(1, min(_default_num_blocks(), B))
        block_b = -(-B // nblk)
    block_b = max(1, block_b)
    nblk = -(-B // block_b)
    if nblk > 1:                     # multi-step grid: tile-align the block
        block_b = -(-block_b // 8) * 8
        nblk = -(-B // block_b)
    Bp = nblk * block_b

    # Pad batch with token id 0; padded rows are dropped after the call.
    tok = jnp.pad(tokens.astype(jnp.int32), ((0, Bp - B), (0, 0)))
    tok_flat = tok.reshape(Bp * L, 1)

    kern = partial(_cnn_kernel, kmax=kmax, seq_len=L, bblk=block_b)
    full = lambda a: pl.BlockSpec(a.shape, lambda b: (0,) * a.ndim)

    out = pl.pallas_call(
        kern,
        out_shape=jax.ShapeDtypeStruct((Bp, out_pad), jnp.float32),
        grid_spec=pltpu.PrefetchScalarGridSpec(
            num_scalar_prefetch=0,
            grid=(nblk,),
            in_specs=[
                pl.BlockSpec((block_b * L, 1), lambda b: (b, 0)),   # tokens
                full(wf), full(bf),          # fused (emb @ conv-tap) tables
                full(mask),                  # constant validity mask
                full(wl), full(bl),          # 128-lane-padded Linear
            ],
            out_specs=pl.BlockSpec((block_b, out_pad), lambda b: (b, 0)),
        ),
        compiler_params=pltpu.CompilerParams(
            dimension_semantics=("parallel",)),
    )(tok_flat, wf, bf, mask, wl, bl)

    return out[:B, :out_dim]


def reference_forward(tokens, emb_table, conv_params, w_label, b_label,
                      kernel_heights=(3, 4, 5)):
    """Plain-JAX mirror of the PyTorch forward (eval mode)."""
    x = emb_table[tokens]                                  # (B, L, E)
    B, L, E = x.shape
    feats = []
    for (w, b), kh in zip(conv_params, kernel_heights):
        w2 = w[:, 0]                                       # (C, kh, E)
        T = L - kh + 1
        acc = sum(jnp.einsum("ble,ce->blc", x[:, j:j + T, :], w2[:, j, :])
                  for j in range(kh)) + b                  # (B, T, C)
        feats.append(jnp.max(jnp.maximum(acc, 0.0), axis=1))
    feat = jnp.concatenate(feats, axis=1)                  # (B, 3C)
    return feat @ w_label.T + b_label                      # (B, 8)


if __name__ == "__main__":
    # Small shapes consistent with the module.
    vocab_size = 50
    embedding_dim = 32        # E
    seq_len = 16              # L
    out_channels = 16         # C
    batch = 16                # B
    output_size = 8
    kernel_heights = (3, 4, 5)

    key = jax.random.PRNGKey(0)
    keys = jax.random.split(key, 10)

    emb_table = jax.random.normal(keys[0], (vocab_size, embedding_dim),
                                  jnp.float32) * 0.1
    input_seqs = jax.random.randint(keys[1], (batch, seq_len), 0, vocab_size)
    input_lengths = jnp.full((batch,), seq_len, jnp.int32)  # unused (as in PyTorch fwd)

    # Conv weights in PyTorch Conv2d layout (C, 1, kh, E) + bias (C,).
    conv_params = []
    for i, kh in enumerate(kernel_heights):
        w = jax.random.normal(keys[2 + 2 * i],
                              (out_channels, 1, kh, embedding_dim),
                              jnp.float32) * 0.05
        b = jax.random.normal(keys[3 + 2 * i], (out_channels,),
                              jnp.float32) * 0.05
        conv_params.append((w, b))

    # Linear in PyTorch layout: weight (8, 3C), bias (8,).
    w_label = jax.random.normal(
        keys[8], (output_size, len(kernel_heights) * out_channels),
        jnp.float32) * 0.05
    b_label = jax.random.normal(keys[9], (output_size,), jnp.float32) * 0.05

    logits = cnn_forward(input_seqs, emb_table, conv_params, w_label, b_label,
                         kernel_heights)
    logits = jax.block_until_ready(logits)

    ref = reference_forward(input_seqs, emb_table, conv_params,
                            w_label, b_label, kernel_heights)
    assert logits.shape == (batch, output_size)
    assert jnp.allclose(logits, ref, atol=2e-4, rtol=2e-4), \
        float(jnp.max(jnp.abs(logits - ref)))

    print("KERNEL_OK")
</pallas_src>

<mosaic_0001>
module attributes {stable_mosaic.version = 11 : i64} {
  func.func @_cnn_kernel(%arg0: i32, %arg1: memref<256x1xi32, #tpu.memory_space<vmem>>, %arg2: memref<5x50x48xf32, #tpu.memory_space<vmem>>, %arg3: memref<1x48xf32, #tpu.memory_space<vmem>>, %arg4: memref<16x48xf32, #tpu.memory_space<vmem>>, %arg5: memref<48x128xf32, #tpu.memory_space<vmem>>, %arg6: memref<1x128xf32, #tpu.memory_space<vmem>>, %arg7: memref<16x128xf32, #tpu.memory_space<vmem>>) attributes {dimension_semantics = [#tpu.dimension_semantics<parallel>], iteration_bounds = array<i64: 1>, scalar_prefetch = 0 : i64, scratch_operands = 0 : i64, tpu.core_type = #tpu.core_type<tc>, window_params = [{transform_indices = @transform_0, window_bounds = array<i64: 256, 1>}, {pipeline_mode = #tpu.pipeline_mode<synchronous>, transform_indices = @transform_1, window_bounds = array<i64: 5, 50, 48>}, {pipeline_mode = #tpu.pipeline_mode<synchronous>, transform_indices = @transform_2, window_bounds = array<i64: 1, 48>}, {pipeline_mode = #tpu.pipeline_mode<synchronous>, transform_indices = @transform_3, window_bounds = array<i64: 16, 48>}, {pipeline_mode = #tpu.pipeline_mode<synchronous>, transform_indices = @transform_4, window_bounds = array<i64: 48, 128>}, {pipeline_mode = #tpu.pipeline_mode<synchronous>, transform_indices = @transform_5, window_bounds = array<i64: 1, 128>}, {transform_indices = @transform_6, window_bounds = array<i64: 16, 128>}]} {
    %c0 = arith.constant 0 : index
    %c0_0 = arith.constant 0 : index
    %0 = vector.load %arg1[%c0, %c0_0] : memref<256x1xi32, #tpu.memory_space<vmem>>, vector<256x1xi32>
    %1 = tpu.iota {dimensions = array<i32: 1>} : vector<256x50xi32>
    %2 = vector.broadcast %0 : vector<256x1xi32> to vector<256x50xi32>
    %3 = arith.cmpi eq, %1, %2 : vector<256x50xi32>
    %4 = arith.extui %3 : vector<256x50xi1> to vector<256x50xi32>
    %5 = arith.sitofp %4 : vector<256x50xi32> to vector<256x50xf32>
    %c0_1 = arith.constant 0 : index
    %c0_2 = arith.constant 0 : index
    %c0_3 = arith.constant 0 : index
    %6 = vector.load %arg2[%c0_1, %c0_2, %c0_3] : memref<5x50x48xf32, #tpu.memory_space<vmem>>, vector<1x50x48xf32>
    %7 = vector.shape_cast %6 : vector<1x50x48xf32> to vector<50x48xf32>
    %cst = arith.constant dense<0.000000e+00> : vector<256x48xf32>
    %8 = tpu.matmul %5, %7, %cst {dimension_numbers = #tpu.dot_dimension_numbers<[1], [0], [0], [1], [0, 0, 1, 1], [], []>} : vector<256x50xf32>, vector<50x48xf32>, vector<256x48xf32> -> vector<256x48xf32>
    %c255_i32 = arith.constant 255 : i32
    %9 = tpu.dynamic_rotate %5 by %c255_i32 dim 0 : vector<256x50xf32>, i32 -> vector<256x50xf32>
    %c1 = arith.constant 1 : index
    %c0_4 = arith.constant 0 : index
    %c0_5 = arith.constant 0 : index
    %10 = vector.load %arg2[%c1, %c0_4, %c0_5] : memref<5x50x48xf32, #tpu.memory_space<vmem>>, vector<1x50x48xf32>
    %11 = vector.shape_cast %10 : vector<1x50x48xf32> to vector<50x48xf32>
    %cst_6 = arith.constant dense<0.000000e+00> : vector<256x48xf32>
    %12 = tpu.matmul %9, %11, %cst_6 {dimension_numbers = #tpu.dot_dimension_numbers<[1], [0], [0], [1], [0, 0, 1, 1], [], []>} : vector<256x50xf32>, vector<50x48xf32>, vector<256x48xf32> -> vector<256x48xf32>
    %13 = arith.addf %8, %12 : vector<256x48xf32>
    %c254_i32 = arith.constant 254 : i32
    %14 = tpu.dynamic_rotate %5 by %c254_i32 dim 0 : vector<256x50xf32>, i32 -> vector<256x50xf32>
    %c2 = arith.constant 2 : index
    %c0_7 = arith.constant 0 : index
    %c0_8 = arith.constant 0 : index
    %15 = vector.load %arg2[%c2, %c0_7, %c0_8] : memref<5x50x48xf32, #tpu.memory_space<vmem>>, vector<1x50x48xf32>
    %16 = vector.shape_cast %15 : vector<1x50x48xf32> to vector<50x48xf32>
    %cst_9 = arith.constant dense<0.000000e+00> : vector<256x48xf32>
    %17 = tpu.matmul %14, %16, %cst_9 {dimension_numbers = #tpu.dot_dimension_numbers<[1], [0], [0], [1], [0, 0, 1, 1], [], []>} : vector<256x50xf32>, vector<50x48xf32>, vector<256x48xf32> -> vector<256x48xf32>
    %18 = arith.addf %13, %17 : vector<256x48xf32>
    %c253_i32 = arith.constant 253 : i32
    %19 = tpu.dynamic_rotate %5 by %c253_i32 dim 0 : vector<256x50xf32>, i32 -> vector<256x50xf32>
    %c3 = arith.constant 3 : index
    %c0_10 = arith.constant 0 : index
    %c0_11 = arith.constant 0 : index
    %20 = vector.load %arg2[%c3, %c0_10, %c0_11] : memref<5x50x48xf32, #tpu.memory_space<vmem>>, vector<1x50x48xf32>
    %21 = vector.shape_cast %20 : vector<1x50x48xf32> to vector<50x48xf32>
    %cst_12 = arith.constant dense<0.000000e+00> : vector<256x48xf32>
    %22 = tpu.matmul %19, %21, %cst_12 {dimension_numbers = #tpu.dot_dimension_numbers<[1], [0], [0], [1], [0, 0, 1, 1], [], []>} : vector<256x50xf32>, vector<50x48xf32>, vector<256x48xf32> -> vector<256x48xf32>
    %23 = arith.addf %18, %22 : vector<256x48xf32>
    %c252_i32 = arith.constant 252 : i32
    %24 = tpu.dynamic_rotate %5 by %c252_i32 dim 0 : vector<256x50xf32>, i32 -> vector<256x50xf32>
    %c4 = arith.constant 4 : index
    %c0_13 = arith.constant 0 : index
    %c0_14 = arith.constant 0 : index
    %25 = vector.load %arg2[%c4, %c0_13, %c0_14] : memref<5x50x48xf32, #tpu.memory_space<vmem>>, vector<1x50x48xf32>
    %26 = vector.shape_cast %25 : vector<1x50x48xf32> to vector<50x48xf32>
    %cst_15 = arith.constant dense<0.000000e+00> : vector<256x48xf32>
    %27 = tpu.matmul %24, %26, %cst_15 {dimension_numbers = #tpu.dot_dimension_numbers<[1], [0], [0], [1], [0, 0, 1, 1], [], []>} : vector<256x50xf32>, vector<50x48xf32>, vector<256x48xf32> -> vector<256x48xf32>
    %28 = arith.addf %23, %27 : vector<256x48xf32>
    %c0_16 = arith.constant 0 : index
    %c0_17 = arith.constant 0 : index
    %29 = vector.load %arg3[%c0_16, %c0_17] : memref<1x48xf32, #tpu.memory_space<vmem>>, vector<1x48xf32>
    %30 = vector.broadcast %29 : vector<1x48xf32> to vector<256x48xf32>
    %31 = arith.addf %28, %30 : vector<256x48xf32>
    %cst_18 = arith.constant 0.000000e+00 : f32
    %32 = vector.broadcast %cst_18 : f32 to vector<256x48xf32>
    %33 = arith.maximumf %31, %32 : vector<256x48xf32>
    %34 = vector.shape_cast %33 : vector<256x48xf32> to vector<16x16x48xf32>
    %c0_19 = arith.constant 0 : index
    %c0_20 = arith.constant 0 : index
    %35 = vector.load %arg4[%c0_19, %c0_20] : memref<16x48xf32, #tpu.memory_space<vmem>>, vector<16x48xf32>
    %36 = vector.shape_cast %35 : vector<16x48xf32> to vector<1x16x48xf32>
    %37 = vector.broadcast %36 : vector<1x16x48xf32> to vector<16x16x48xf32>
    %38 = arith.mulf %34, %37 : vector<16x16x48xf32>
    %cst_21 = arith.constant dense<0xFF800000> : vector<16x48xf32>
    %39 = vector.multi_reduction <maximumf>, %38, %cst_21 [1] : vector<16x16x48xf32> to vector<16x48xf32>
    %c0_22 = arith.constant 0 : index
    %c0_23 = arith.constant 0 : index
    %40 = vector.load %arg5[%c0_22, %c0_23] : memref<48x128xf32, #tpu.memory_space<vmem>>, vector<48x128xf32>
    %cst_24 = arith.constant dense<0.000000e+00> : vector<16x128xf32>
    %41 = tpu.matmul %39, %40, %cst_24 {dimension_numbers = #tpu.dot_dimension_numbers<[1], [0], [0], [1], [0, 0, 1, 1], [], []>} : vector<16x48xf32>, vector<48x128xf32>, vector<16x128xf32> -> vector<16x128xf32>
    %c0_25 = arith.constant 0 : index
    %c0_26 = arith.constant 0 : index
    %42 = vector.load %arg6[%c0_25, %c0_26] : memref<1x128xf32, #tpu.memory_space<vmem>>, vector<1x128xf32>
    %43 = vector.broadcast %42 : vector<1x128xf32> to vector<16x128xf32>
    %44 = arith.addf %41, %43 : vector<16x128xf32>
    %c0_27 = arith.constant 0 : index
    %c0_28 = arith.constant 0 : index
    %45 = vector.load %arg7[%c0_27, %c0_28] : memref<16x128xf32, #tpu.memory_space<vmem>>, vector<16x128xf32>
    tpu.vector_store %arg7[%c0_27, %c0_28], %44 {strides = array<i32>} : memref<16x128xf32, #tpu.memory_space<vmem>>, vector<16x128xf32>,
    return
  }
  func.func @transform_0(%arg0: i32) -> (i32, i32) {
    %c0_i32 = arith.constant 0 : i32
    %c0_i32_0 = arith.constant 0 : i32
    return %arg0, %c0_i32 : i32, i32
  }
  func.func @transform_1(%arg0: i32) -> (i32, i32, i32) {
    %c0_i32 = arith.constant 0 : i32
    %c0_i32_0 = arith.constant 0 : i32
    %c0_i32_1 = arith.constant 0 : i32
    %c0_i32_2 = arith.constant 0 : i32
    return %c0_i32, %c0_i32_0, %c0_i32_1 : i32, i32, i32
  }
  func.func @transform_2(%arg0: i32) -> (i32, i32) {
    %c0_i32 = arith.constant 0 : i32
    %c0_i32_0 = arith.constant 0 : i32
    %c0_i32_1 = arith.constant 0 : i32
    return %c0_i32, %c0_i32_0 : i32, i32
  }
  func.func @transform_3(%arg0: i32) -> (i32, i32) {
    %c0_i32 = arith.constant 0 : i32
    %c0_i32_0 = arith.constant 0 : i32
    %c0_i32_1 = arith.constant 0 : i32
    return %c0_i32, %c0_i32_0 : i32, i32
  }
  func.func @transform_4(%arg0: i32) -> (i32, i32) {
    %c0_i32 = arith.constant 0 : i32
    %c0_i32_0 = arith.constant 0 : i32
    %c0_i32_1 = arith.constant 0 : i32
    return %c0_i32, %c0_i32_0 : i32, i32
  }
  func.func @transform_5(%arg0: i32) -> (i32, i32) {
    %c0_i32 = arith.constant 0 : i32
    %c0_i32_0 = arith.constant 0 : i32
    %c0_i32_1 = arith.constant 0 : i32
    return %c0_i32, %c0_i32_0 : i32, i32
  }
  func.func @transform_6(%arg0: i32) -> (i32, i32) {
    %c0_i32 = arith.constant 0 : i32
    %c0_i32_0 = arith.constant 0 : i32
    return %arg0, %c0_i32 : i32, i32
  }
}

</mosaic_0001>

<bundles_post_ra>
// kernel: tpu_custom_call.1
= control target key start
LH: loop header
LB: loop body
LE: loop exit
PB: predicated region body
PF: predicated region fallthrough
CT: control target
= control target key end

     0   :  { %v3466_v2 = vmov 0   ;;  %vm429_vm0 = vcmask 1041408   ;;  %s4972_s0 = inlined_call_operand.vmem [shape: s32[256,1], index: 0, kind: input, shape index: {}]   ;;  %s4973_s1 = inlined_call_operand.vmem [shape: f32[5,50,48], index: 1, kind: input, shape index: {}]   ;;  %s4974_s2 = inlined_call_operand.vmem [shape: f32[1,48], index: 2, kind: input, shape index: {}]   ;;  %s4975_s3 = inlined_call_operand.vmem [shape: f32[16,48], index: 3, kind: input, shape index: {}]   ;;  %s4976_s4 = inlined_call_operand.vmem [shape: f32[48,128], index: 4, kind: input, shape index: {}]   ;;  %s4977_s5 = inlined_call_operand.vmem [shape: f32[1,128], index: 5, kind: input, shape index: {}]   ;;  %s4978_s6 = inlined_call_operand.hbm [shape: f32[16,128], index: 6, kind: output, shape index: {}]  }
   0x1   :  { %v26_v0 = vld [vmem:[%s4972_s0 + $0x10] sm:$0xff]  ;;  %v24_v1 = vld [vmem:[%s4972_s0] sm:$0xff]  ;;  %3443 = vset.pattern.permute.xlu1 %v3466_v2  ;;  %3442 = vset.pattern.permute.xlu0 %v3466_v2  ;;  %v27_v3 = vld [vmem:[%s4972_s0 + $0x18] sm:$0xff] }
   0x2   :  { %65 = vperm.xlu1 %3443, %v26_v0   ;;  %59 = vperm.xlu0 %3442, %v24_v1   ;;  %v25_v4 = vld [vmem:[%s4972_s0 + $0x8] sm:$0xff]  ;;  %v42_v5 = vld [vmem:[%s4972_s0 + $0x90] sm:$0xff]  ;;  %v28_v6 = vld [vmem:[%s4972_s0 + $0x20] sm:$0xff] }
   0x3   :  { %v2704_v7 = vld [vmem:[%s4973_s1 + $0x68] sm:$0x3]  ;;  %v44_v8 = vld [vmem:[%s4972_s0 + $0xa0] sm:$0xff]  ;;  %v43_v9 = vld [vmem:[%s4972_s0 + $0x98] sm:$0xff] }
   0x4   :  { %3098 = vmatprep.subr.msk.mxu0 %vm429_vm0, %v2704_v7  ;;  %v2703_v10 = vld [vmem:[%s4973_s1 + $0x60] sm:$0xff]  ;;  %3423 = vmatprep.subr.msk.mxu1 %vm429_vm0, %v2704_v7  ;;  %v2702_v11 = vld [vmem:[%s4973_s1 + $0x58] sm:$0xff] }
   0x5   :  { %3099 = vmatpush3.msk.msra.mxu0 %vm429_vm0, %v2704_v7  ;;  %3430 = vmatpush3.msk.msra.mxu1 %vm429_vm0, %v2704_v7 }
   0x6   :  { %68 = vperm.xlu1 %3443, %v27_v3   ;;  %62 = vperm.xlu0 %3442, %v25_v4  }
   0x7   :  { %3100 = vmatprep.subr.mxu0 %v2703_v10  ;;  %3424 = vmatprep.subr.mxu1 %v2703_v10 }
   0xa   :  { %113 = vperm.xlu1 %3443, %v42_v5   ;;  %71 = vperm.xlu0 %3442, %v28_v6  }
   0xb   :  { %11 = vsyncpa [#allocation3], 0  ;;  %v30_v12 = vld [vmem:[%s4972_s0 + $0x30] sm:$0xff]  ;;  %v29_v13 = vld [vmem:[%s4972_s0 + $0x28] sm:$0xff]  ;;  %3101 = vmatpush3.msra.mxu0 %v2703_v10  ;;  %3431 = vmatpush3.msra.mxu1 %v2703_v10  ;;  %v56_v42 = vlaneseq  ;;  %v3467_v49 = vmov 0.0   ;;  %vm332_vm6 = vcmask 408576  }
   0xc   :  { %3102 = vmatprep.subr.mxu0 %v2702_v11  ;;  %v2701_v14 = vld [vmem:[%s4973_s1 + $0x50] sm:$0xff]  ;;  %3425 = vmatprep.subr.mxu1 %v2702_v11  ;;  %v2700_v15 = vld [vmem:[%s4973_s1 + $0x48] sm:$0xff]  ;;  %v2699_v18 = vld [vmem:[%s4973_s1 + $0x40] sm:$0xff]  ;;  %s3468_s24 = smov [#allocation2]  }
   0xd   :  { %3103 = vmatpush3.msra.mxu0 %v2702_v11  ;;  %3432 = vmatpush3.msra.mxu1 %v2702_v11  ;;  %v46_v16 = vld [vmem:[%s4972_s0 + $0xb0] sm:$0xff]  ;;  %v45_v17 = vld [vmem:[%s4972_s0 + $0xa8] sm:$0xff]  ;;  %v32_v19 = vld [vmem:[%s4972_s0 + $0x40] sm:$0xff]  ;;  %v3641_v43 = vand.u32 127, %v56_v42  ;;  %v3645_v46 = vshrl.u32 %v56_v42, 7  ;;  %s2655_s25 = sshll.u32 %s3468_s24, 4  ;;  %s2656_s25 = int_to_ptr.vmem [resolvable:$true] %s2655_s25 }
   0xe   :  { %119 = vperm.xlu1 %3443, %v44_v8   ;;  %116 = vperm.xlu0 %3442, %v43_v9   ;;  %v31_v20 = vld [vmem:[%s4972_s0 + $0x38] sm:$0xff]  ;;  %v48_v22 = vld [vmem:[%s4972_s0 + $0xc0] sm:$0xff]  ;;  %v34_v24 = vld [vmem:[%s4972_s0 + $0x50] sm:$0xff]  ;;  %s3444_s26 = scalar_lea.vmem %s2656_s25, 256  ;;  %p3449_p1 = scmp.lt.s32.totalorder %s2656_s25, %s2656_s25 }
   0xf   :  { %3104 = vmatprep.subr.mxu0 %v2701_v14  ;;  %3426 = vmatprep.subr.mxu1 %v2701_v14  ;;  %v2698_v21 = vld [vmem:[%s4973_s1 + $0x38] sm:$0xff]  ;;  %v33_v25 = vld [vmem:[%s4972_s0 + $0x48] sm:$0xff]  ;;  %v3588_v26 = vld [vmem:[%s4973_s1 + $0xa0] sm:$0x3]  ;;  %vm291_vm5 = vcmp.lt.s32.totalorder %v3645_v46, 7  ;;  %vm1443_vm11 = vcmp.lt.s32.totalorder %v3645_v46, 5  ;;  %p3445_p0 = scmp.ne.s32.totalorder %s2656_s25, %s3444_s26  ;;  %p3450_p2 = scmp.lt.s32.totalorder %s3444_s26, %s3444_s26 }
  0x10   :  { %3105 = vmatpush3.msra.mxu0 %v2701_v14  ;;  %3433 = vmatpush3.msra.mxu1 %v2701_v14  ;;  %v47_v23 = vld [vmem:[%s4972_s0 + $0xb8] sm:$0xff]  ;;  %v50_v27 = vld [vmem:[%s4972_s0 + $0xd0] sm:$0xff]  ;;  %v49_v28 = vld [vmem:[%s4972_s0 + $0xc8] sm:$0xff] }
  0x11   :  { %3106 = vmatprep.subr.mxu0 %v2700_v15  ;;  %3427 = vmatprep.subr.mxu1 %v2700_v15  ;;  %v36_v29 = vld [vmem:[%s4972_s0 + $0x60] sm:$0xff]  ;;  %v35_v30 = vld [vmem:[%s4972_s0 + $0x58] sm:$0xff]  ;;  %v3607_v31 = vld [vmem:[%s4973_s1 + $0x30] sm:$0x3]  ;;  %p3451_p3 = por %p3450_p2, %p3449_p1 }
  0x12   :  { %77 = vperm.xlu1 %3443, %v30_v12   ;;  %74 = vperm.xlu0 %3442, %v29_v13   ;;  %v52_v32 = vld [vmem:[%s4972_s0 + $0xe0] sm:$0xff]  ;;  %v51_v33 = vld [vmem:[%s4972_s0 + $0xd8] sm:$0xff]  ;;  %v38_v34 = vld [vmem:[%s4972_s0 + $0x70] sm:$0xff] }
  0x13   :  { %3107 = vmatpush3.msra.mxu0 %v2700_v15  ;;  %3434 = vmatpush3.msra.mxu1 %v2700_v15  ;;  %v37_v35 = vld [vmem:[%s4972_s0 + $0x68] sm:$0xff]  ;;  %v54_v36 = vld [vmem:[%s4972_s0 + $0xf0] sm:$0xff]  ;;  %v40_v38 = vld [vmem:[%s4972_s0 + $0x80] sm:$0xff]  ;;  %p3452_p4 = pnand %p3451_p3, %p3445_p0 }
  0x14   :  { %3108 = vmatprep.subr.mxu0 %v2699_v18  ;;  %3428 = vmatprep.subr.mxu1 %v2699_v18  ;;  %v53_v37 = vld [vmem:[%s4972_s0 + $0xe8] sm:$0xff]  ;;  %v39_v39 = vld [vmem:[%s4972_s0 + $0x78] sm:$0xff]  ;;  %v2775_v7 = vld [vmem:[%s4973_s1 + $0x90] sm:$0xff] }
  0x15   :  { %3109 = vmatpush3.msra.mxu0 %v2699_v18  ;;  %3435 = vmatpush3.msra.mxu1 %v2699_v18  ;;  %v41_v40 = vld [vmem:[%s4972_s0 + $0x88] sm:$0xff]  ;;  %v55_v41 = vld [vmem:[%s4972_s0 + $0xf8] sm:$0xff] }
  0x16   :  { %125 = vperm.xlu1 %3443, %v46_v16   ;;  %122 = vperm.xlu0 %3442, %v45_v17   ;;  %v2776_v0 = vld [vmem:[%s4973_s1 + $0x98] sm:$0xff]  ;;  %v2774_v12 = vld [vmem:[%s4973_s1 + $0x88] sm:$0xff]  ;;  %v2773_v17 = vld [vmem:[%s4973_s1 + $0x80] sm:$0xff] }
  0x17   :  { %3110 = vmatprep.subr.mxu0 %v2698_v21  ;;  %3429 = vmatprep.subr.mxu1 %v2698_v21 }
  0x18   :  { %3111 = vmatpush3.msra.mxu0 %v2698_v21  ;;  %3436 = vmatpush3.msra.mxu1 %v2698_v21 }
  0x19   :  { %3222 = vmatprep.subr.msk.mxu0 %vm429_vm0, %v3588_v26  ;;  %3160 = vmatprep.subr.msk.mxu1 %vm429_vm0, %v3607_v31 }
  0x1a   :  { %83 = vperm.xlu1 %3443, %v32_v19   ;;  %80 = vperm.xlu0 %3442, %v31_v20  }
  0x1e   :  { %131 = vperm.xlu1 %3443, %v48_v22   ;;  %128 = vperm.xlu0 %3442, %v47_v23  }
  0x22   :  { %89 = vperm.xlu1 %3443, %v34_v24   ;;  %86 = vperm.xlu0 %3442, %v33_v25   ;;  %v255_v24 = vld [vmem:[%s4973_s1 + $0x28] sm:$0xff]  ;;  %v2772_v25 = vld [vmem:[%s4973_s1 + $0x78] sm:$0xff] }
  0x26   :  { %137 = vperm.xlu1 %3443, %v50_v27   ;;  %134 = vperm.xlu0 %3442, %v49_v28  }
  0x2a   :  { %95 = vperm.xlu1 %3443, %v36_v29   ;;  %92 = vperm.xlu0 %3442, %v35_v30   ;;  %v254_v29 = vld [vmem:[%s4973_s1 + $0x20] sm:$0xff] }
  0x2e   :  { %143 = vperm.xlu1 %3443, %v52_v32   ;;  %140 = vperm.xlu0 %3442, %v51_v33  }
  0x32   :  { %101 = vperm.xlu1 %3443, %v38_v34   ;;  %98 = vperm.xlu0 %3442, %v37_v35   ;;  %v253_v35 = vld [vmem:[%s4973_s1 + $0x18] sm:$0xff] }
  0x36   :  { %149 = vperm.xlu1 %3443, %v54_v36   ;;  %146 = vperm.xlu0 %3442, %v53_v37   ;;  %v2771_v36 = vld [vmem:[%s4973_s1 + $0x70] sm:$0xff] }
  0x3a   :  { %107 = vperm.xlu1 %3443, %v40_v38   ;;  %104 = vperm.xlu0 %3442, %v39_v39  }
  0x3e   :  { %110 = vperm.xlu1 %3443, %v41_v40   ;;  %152 = vperm.xlu0 %3442, %v55_v41   ;;  %v252_v40 = vld [vmem:[%s4973_s1 + $0x10] sm:$0xff] }
  0x7d   :  { %v66_v44 = vpop.permute.xlu1 %65  ;;  %v60_v45 = vpop.permute.xlu0 %59 }
  0x7e   :  { %vm156_vm1 = vcmp.eq.s32.totalorder %v3641_v43, %v66_v44  ;;  %vm154_vm2 = vcmp.eq.s32.totalorder %v3641_v43, %v60_v45 }
  0x7f   :  { %v3648_v50 = vsel %vm156_vm1, 1.0, %v3467_v49  ;;  %v3651_v51 = vsel %vm154_vm2, 1.0, %v3467_v49 }
  0x80   :  { %v259_v54 = vrot.slane %v3648_v50, 1  ;;  %v257_v58 = vrot.slane %v3651_v51, 1  ;;  %v4979_v10 = vrot.slane %v3651_v51, 3 }
  0x81   :  { %v69_v47 = vpop.permute.xlu1 %68  ;;  %v63_v48 = vpop.permute.xlu0 %62 }
  0x82   :  { %vm157_vm3 = vcmp.eq.s32.totalorder %v3641_v43, %v69_v47  ;;  %vm155_vm4 = vcmp.eq.s32.totalorder %v3641_v43, %v63_v48  ;;  %v251_v48 = vld [vmem:[%s4973_s1 + $0x8] sm:$0xff] }
  0x83   :  { %v3656_v52 = vsel %vm157_vm3, 1.0, %v3467_v49  ;;  %v3659_v53 = vsel %vm155_vm4, 1.0, %v3467_v49 }
  0x84   :  { %v260_v55 = vrot.slane %v3656_v52, 1  ;;  %v258_v59 = vrot.slane %v3659_v53, 1  ;;  %v4981_v1 = vrot.slane %v3659_v53, 3 }
  0x85   :  { %v114_v56 = vpop.permute.xlu1 %113  ;;  %v72_v57 = vpop.permute.xlu0 %71 }
  0x86   :  { %vm158_vm7 = vcmp.eq.s32.totalorder %v3641_v43, %v72_v57  ;;  %vm172_vm8 = vcmp.eq.s32.totalorder %v3641_v43, %v114_v56  ;;  %v322_v61 = vsel %vm291_vm5, %v257_v58, %v258_v59  ;;  %v321_v62 = vsel %vm291_vm5, %v258_v59, %v259_v54  ;;  %v250_v59 = vld [vmem:[%s4973_s1] sm:$0xff] }
  0x87   :  { %v3669_v60 = vsel %vm158_vm7, 1.0, %v3467_v49  ;;  %3112 = vmatprep.mubr.msk.f32.mxu0 %vm332_vm6, %v322_v61  ;;  %v320_v3 = vsel %vm291_vm5, %v259_v54, %v260_v55  ;;  %v3687_v5 = vsel %vm172_vm8, 1.0, %v3467_v49  ;;  %v3725_v18 = vsel %vm1443_vm11, %v4979_v10, %v4981_v1  ;;  %v3799_v54 = vld [vmem:[%s4973_s1 + $0x110] sm:$0x3] }
  0x88   :  { %v261_v63 = vrot.slane %v3669_v60, 1  ;;  %3113 = vmatmul.mubr.msk.f32.vlgmr.msra.gmra.mxu0 %vm332_vm6, %v321_v62  ;;  %v275_v15 = vrot.slane %v3687_v5, 1  ;;  %4993 = vst [vmem:[#allocation5_spill] sm:$0xff] %v3725_v18 }
  0x89   :  { %v120_v2 = vpop.permute.xlu1 %119  ;;  %v117_v4 = vpop.permute.xlu0 %116  ;;  %3115 = vmatprep.mubr.msk.f32.mxu0 %vm332_vm6, %v320_v3  ;;  %3223 = vmatpush3.msk.msra.mxu0 %vm429_vm0, %v3588_v26  ;;  %v3825_v3 = vld [vmem:[%s4973_s1 + $0xd8] sm:$0x3] }
  0x8a   :  { %vm174_vm9 = vcmp.eq.s32.totalorder %v3641_v43, %v120_v2  ;;  %vm173_vm10 = vcmp.eq.s32.totalorder %v3641_v43, %v117_v4  ;;  %v319_v6 = vsel %vm291_vm5, %v260_v55, %v261_v63  ;;  %3224 = vmatprep.subr.mxu0 %v2776_v0 }
  0x8b   :  { %v3700_v8 = vsel %vm174_vm9, 1.0, %v3467_v49  ;;  %v3703_v9 = vsel %vm173_vm10, 1.0, %v3467_v49  ;;  %3225 = vmatpush3.msra.mxu0 %v2776_v0 }
  0x8c   :  { %v277_v11 = vrot.slane %v3700_v8, 1  ;;  %3116 = vmatmul.mubr.msk.f32.gmra.mxu0 %vm332_vm6, %v319_v6  ;;  %v276_v16 = vrot.slane %v3703_v9, 1  ;;  %3226 = vmatprep.subr.mxu0 %v2775_v7 }
  0x8d   :  { %v78_v13 = vpop.permute.xlu1 %77  ;;  %v75_v14 = vpop.permute.xlu0 %74  ;;  %3227 = vmatpush3.msra.mxu0 %v2775_v7 }
  0x8e   :  { %vm160_vm12 = vcmp.eq.s32.totalorder %v3641_v43, %v78_v13  ;;  %vm159_vm13 = vcmp.eq.s32.totalorder %v3641_v43, %v75_v14  ;;  %v304_v21 = vsel %vm291_vm5, %v275_v15, %v276_v16  ;;  %v303_v22 = vsel %vm291_vm5, %v276_v16, %v277_v11  ;;  %3228 = vmatprep.subr.mxu0 %v2774_v12 }
  0x8f   :  { %v3728_v19 = vsel %vm160_vm12, 1.0, %v3467_v49  ;;  %v3731_v20 = vsel %vm159_vm13, 1.0, %v3467_v49  ;;  %3139 = vmatprep.mubr.msk.f32.mxu1 %vm332_vm6, %v304_v21  ;;  %3229 = vmatpush3.msra.mxu0 %v2774_v12 }
  0x90   :  { %v263_v23 = vrot.slane %v3728_v19, 1  ;;  %v262_v26 = vrot.slane %v3731_v20, 1  ;;  %3140 = vmatmul.mubr.msk.f32.vlgmr.msra.gmra.mxu1 %vm332_vm6, %v303_v22  ;;  %3230 = vmatprep.subr.mxu0 %v2773_v17 }
  0x91   :  { %v126_v27 = vpop.permute.xlu1 %125  ;;  %v123_v28 = vpop.permute.xlu0 %122  ;;  %3161 = vmatpush3.msk.msra.mxu1 %vm429_vm0, %v3607_v31  ;;  %3231 = vmatpush3.msra.mxu0 %v2773_v17 }
  0x92   :  { %vm176_vm14 = vcmp.eq.s32.totalorder %v3641_v43, %v126_v27  ;;  %vm175_vm15 = vcmp.eq.s32.totalorder %v3641_v43, %v123_v28  ;;  %v318_v33 = vsel %vm291_vm5, %v261_v63, %v262_v26  ;;  %v317_v34 = vsel %vm291_vm5, %v262_v26, %v263_v23  ;;  %3162 = vmatprep.subr.mxu1 %v255_v24 }
  0x93   :  { %v3757_v30 = vsel %vm176_vm14, 1.0, %v3467_v49  ;;  %v3760_v32 = vsel %vm175_vm15, 1.0, %v3467_v49  ;;  %3232 = vmatprep.subr.mxu0 %v2772_v25  ;;  %3118 = vmatprep.mubr.msk.f32.mxu0 %vm332_vm6, %v318_v33 }
  0x94   :  { %v279_v31 = vrot.slane %v3757_v30, 1  ;;  %3163 = vmatpush3.msra.mxu1 %v255_v24  ;;  %v278_v37 = vrot.slane %v3760_v32, 1  ;;  %3119 = vmatmul.mubr.msk.f32.gmra.mxu0 %vm332_vm6, %v317_v34 }
  0x95   :  { %v84_v38 = vpop.permute.xlu1 %83  ;;  %v81_v39 = vpop.permute.xlu0 %80  ;;  %3164 = vmatprep.subr.mxu1 %v254_v29  ;;  %3233 = vmatpush3.msra.mxu0 %v2772_v25 }
  0x96   :  { %vm162_vm1 = vcmp.eq.s32.totalorder %v3641_v43, %v84_v38  ;;  %vm161_vm2 = vcmp.eq.s32.totalorder %v3641_v43, %v81_v39  ;;  %3165 = vmatpush3.msra.mxu1 %v254_v29  ;;  %v302_v44 = vsel %vm291_vm5, %v277_v11, %v278_v37  ;;  %v301_v45 = vsel %vm291_vm5, %v278_v37, %v279_v31 }
  0x97   :  { %v3782_v41 = vsel %vm162_vm1, 1.0, %v3467_v49  ;;  %v3785_v42 = vsel %vm161_vm2, 1.0, %v3467_v49  ;;  %3166 = vmatprep.subr.mxu1 %v253_v35  ;;  %3234 = vmatprep.subr.mxu0 %v2771_v36 }
  0x98   :  { %v265_v47 = vrot.slane %v3782_v41, 1  ;;  %3142 = vmatprep.mubr.msk.f32.mxu1 %vm332_vm6, %v302_v44  ;;  %3167 = vmatpush3.msra.mxu1 %v253_v35  ;;  %v264_v55 = vrot.slane %v3785_v42, 1 }
  0x99   :  { %3143 = vmatmul.mubr.msk.f32.gmra.mxu1 %vm332_vm6, %v301_v45  ;;  %v132_v56 = vpop.permute.xlu1 %131  ;;  %v129_v57 = vpop.permute.xlu0 %128  ;;  %3168 = vmatprep.subr.mxu1 %v252_v40 }
  0x9a   :  { %vm178_vm3 = vcmp.eq.s32.totalorder %v3641_v43, %v132_v56  ;;  %vm177_vm4 = vcmp.eq.s32.totalorder %v3641_v43, %v129_v57  ;;  %3169 = vmatpush3.msra.mxu1 %v252_v40  ;;  %3235 = vmatpush3.msra.mxu0 %v2771_v36  ;;  %v316_v63 = vsel %vm291_vm5, %v263_v23, %v264_v55 }
  0x9b   :  { %v3809_v61 = vsel %vm178_vm3, 1.0, %v3467_v49  ;;  %v3812_v62 = vsel %vm177_vm4, 1.0, %v3467_v49  ;;  %v315_v0 = vsel %vm291_vm5, %v264_v55, %v265_v47  ;;  %3170 = vmatprep.subr.mxu1 %v251_v48  ;;  %3346 = vmatprep.subr.msk.mxu0 %vm429_vm0, %v3799_v54  ;;  %vm1014_vm3 = vcmp.lt.s32.totalorder %v3645_v46, 6 }
  0x9c   :  { %v281_v2 = vrot.slane %v3809_v61, 1  ;;  %3121 = vmatprep.mubr.msk.f32.mxu0 %vm332_vm6, %v316_v63  ;;  %3171 = vmatpush3.msra.mxu1 %v251_v48  ;;  %v280_v4 = vrot.slane %v3812_v62, 1 }
  0x9d   :  { %3122 = vmatmul.mubr.msk.f32.gmra.mxu0 %vm332_vm6, %v315_v0  ;;  %v90_v6 = vpop.permute.xlu1 %89  ;;  %v87_v7 = vpop.permute.xlu0 %86  ;;  %3172 = vmatprep.subr.mxu1 %v250_v59 }
  0x9e   :  { %vm164_vm7 = vcmp.eq.s32.totalorder %v3641_v43, %v90_v6  ;;  %vm163_vm8 = vcmp.eq.s32.totalorder %v3641_v43, %v87_v7  ;;  %3173 = vmatpush3.msra.mxu1 %v250_v59  ;;  %v300_v13 = vsel %vm291_vm5, %v279_v31, %v280_v4  ;;  %v299_v14 = vsel %vm291_vm5, %v280_v4, %v281_v2 }
  0x9f   :  { %v3832_v11 = vsel %vm164_vm7, 1.0, %v3467_v49  ;;  %v3835_v12 = vsel %vm163_vm8, 1.0, %v3467_v49  ;;  %3284 = vmatprep.subr.msk.mxu1 %vm429_vm0, %v3825_v3  ;;  %3145 = vmatprep.mubr.msk.f32.mxu1 %vm332_vm6, %v300_v13  ;;  %v984_v7 = vrot.slane %v3648_v50, 2  ;;  %v985_v13 = vrot.slane %v3656_v52, 2 }
  0xa0   :  { %v267_v16 = vrot.slane %v3832_v11, 1  ;;  %v266_v17 = vrot.slane %v3835_v12, 1  ;;  %3146 = vmatmul.mubr.msk.f32.gmra.mxu1 %vm332_vm6, %v299_v14 }
  0xa1   :  { %v138_v21 = vpop.permute.xlu1 %137  ;;  %v135_v22 = vpop.permute.xlu0 %134 }
  0xa2   :  { %vm180_vm9 = vcmp.eq.s32.totalorder %v3641_v43, %v138_v21  ;;  %vm179_vm10 = vcmp.eq.s32.totalorder %v3641_v43, %v135_v22  ;;  %v314_v25 = vsel %vm291_vm5, %v265_v47, %v266_v17  ;;  %v313_v26 = vsel %vm291_vm5, %v266_v17, %v267_v16 }
  0xa3   :  { %v3850_v23 = vsel %vm180_vm9, 1.0, %v3467_v49  ;;  %v3853_v24 = vsel %vm179_vm10, 1.0, %v3467_v49  ;;  %3124 = vmatprep.mubr.msk.f32.mxu0 %vm332_vm6, %v314_v25  ;;  %vm1872_vm10 = vcmp.lt.s32.totalorder %v3645_v46, 4  ;;  %v1421_v22 = vrot.slane %v3832_v11, 3 }
  0xa4   :  { %4994 = vst [vmem:[#allocation6_spill] sm:$0xff] %v3850_v23  ;;  %v283_v27 = vrot.slane %v3850_v23, 1  ;;  %v282_v28 = vrot.slane %v3853_v24, 1  ;;  %3125 = vmatmul.mubr.msk.f32.gmra.mxu0 %vm332_vm6, %v313_v26  ;;  %v1849_v21 = vrot.slane %v3835_v12, 4 }
  0xa5   :  { %v96_v29 = vpop.permute.xlu1 %95  ;;  %v93_v33 = vpop.permute.xlu0 %92 }
  0xa6   :  { %vm166_vm12 = vcmp.eq.s32.totalorder %v3641_v43, %v96_v29  ;;  %vm165_vm13 = vcmp.eq.s32.totalorder %v3641_v43, %v93_v33  ;;  %v298_v35 = vsel %vm291_vm5, %v281_v2, %v282_v28  ;;  %v297_v36 = vsel %vm291_vm5, %v282_v28, %v283_v27 }
  0xa7   :  { %v3866_v34 = vsel %vm166_vm12, 1.0, %v3467_v49  ;;  %v3869_v31 = vsel %vm165_vm13, 1.0, %v3467_v49  ;;  %3148 = vmatprep.mubr.msk.f32.mxu1 %vm332_vm6, %v298_v35  ;;  %v4980_v29 = vrot.slane %v3651_v51, 2  ;;  %v983_v35 = vrot.slane %v3659_v53, 2 }
  0xa8   :  { %v269_v37 = vrot.slane %v3866_v34, 1  ;;  %v268_v38 = vrot.slane %v3869_v31, 1  ;;  %3149 = vmatmul.mubr.msk.f32.gmra.mxu1 %vm332_vm6, %v297_v36 }
  0xa9   :  { %v144_v39 = vpop.permute.xlu1 %143  ;;  %v141_v40 = vpop.permute.xlu0 %140  ;;  %v1044_v10 = vsel %vm1014_vm3, %v983_v35, %v984_v7 }
  0xaa   :  { %vm182_vm14 = vcmp.eq.s32.totalorder %v3641_v43, %v144_v39  ;;  %vm181_vm15 = vcmp.eq.s32.totalorder %v3641_v43, %v141_v40  ;;  %v312_v47 = vsel %vm291_vm5, %v267_v16, %v268_v38  ;;  %v311_v48 = vsel %vm291_vm5, %v268_v38, %v269_v37 }
  0xab   :  { %v3882_v44 = vsel %vm182_vm14, 1.0, %v3467_v49  ;;  %v3885_v45 = vsel %vm181_vm15, 1.0, %v3467_v49  ;;  %3127 = vmatprep.mubr.msk.f32.mxu0 %vm332_vm6, %v312_v47  ;;  %v986_v39 = vrot.slane %v3669_v60, 2  ;;  %v1852_v38 = vrot.slane %v3866_v34, 4 }
  0xac   :  { %4995 = vst [vmem:[#allocation7_spill] sm:$0xff] %v3882_v44  ;;  %4996 = vst [vmem:[#allocation8_spill] sm:$0xff] %v3885_v45  ;;  %v285_v55 = vrot.slane %v3882_v44, 1  ;;  %v284_v56 = vrot.slane %v3885_v45, 1  ;;  %3128 = vmatmul.mubr.msk.f32.gmra.mxu0 %vm332_vm6, %v311_v48  ;;  %v3939_v48 = vsel %vm1014_vm3, %v984_v7, %v985_v13  ;;  %vm2554_vm14 = vcmask 1044484  }
  0xad   :  { %v102_v57 = vpop.permute.xlu1 %101  ;;  %v99_v59 = vpop.permute.xlu0 %98  ;;  %vm2556_vm15 = vcmask 1045509  }
  0xae   :  { %vm168_vm1 = vcmp.eq.s32.totalorder %v3641_v43, %v102_v57  ;;  %vm167_vm2 = vcmp.eq.s32.totalorder %v3641_v43, %v99_v59  ;;  %v296_v2 = vsel %vm291_vm5, %v283_v27, %v284_v56  ;;  %v295_v4 = vsel %vm291_vm5, %v284_v56, %v285_v55 }
  0xaf   :  { %v3898_v63 = vsel %vm168_vm1, 1.0, %v3467_v49  ;;  %v3901_v0 = vsel %vm167_vm2, 1.0, %v3467_v49  ;;  %3151 = vmatprep.mubr.msk.f32.mxu1 %vm332_vm6, %v296_v2  ;;  %v3971_v56 = vsel %vm1014_vm3, %v985_v13, %v986_v39  ;;  %v1419_v57 = vrot.slane %v3782_v41, 3 }
  0xb0   :  { %v271_v6 = vrot.slane %v3898_v63, 1  ;;  %v270_v14 = vrot.slane %v3901_v0, 1  ;;  %3152 = vmatmul.mubr.msk.f32.gmra.mxu1 %vm332_vm6, %v295_v4  ;;  %v1854_v18 = vrot.slane %v3898_v63, 4  ;;  %vm2558_vm1 = vcmask 1046534  }
  0xb1   :  { %v150_v16 = vpop.permute.xlu1 %149  ;;  %v147_v17 = vpop.permute.xlu0 %146  ;;  %vm2560_vm2 = vcmask 1047559  }
  0xb2   :  { %vm184_vm4 = vcmp.eq.s32.totalorder %v3641_v43, %v150_v16  ;;  %vm183_vm7 = vcmp.eq.s32.totalorder %v3641_v43, %v147_v17  ;;  %v310_v27 = vsel %vm291_vm5, %v269_v37, %v270_v14  ;;  %v309_v28 = vsel %vm291_vm5, %v270_v14, %v271_v6 }
  0xb3   :  { %v3919_v25 = vsel %vm184_vm4, 1.0, %v3467_v49  ;;  %v3922_v26 = vsel %vm183_vm7, 1.0, %v3467_v49  ;;  %3130 = vmatprep.mubr.msk.f32.mxu0 %vm332_vm6, %v310_v27  ;;  %v4982_v17 = vrot.slane %v3731_v20, 2  ;;  %v1416_v16 = vrot.slane %v3731_v20, 3 }
  0xb4   :  { %4997 = vst [vmem:[#allocation9_spill] sm:$0xff] %v3919_v25  ;;  %4998 = vst [vmem:[#allocation10_spill] sm:$0xff] %v3922_v26  ;;  %v287_v36 = vrot.slane %v3919_v25, 1  ;;  %v286_v40 = vrot.slane %v3922_v26, 1  ;;  %3131 = vmatmul.mubr.msk.f32.gmra.mxu0 %vm332_vm6, %v309_v28  ;;  %v1045_v28 = vsel %vm1014_vm3, %v4980_v29, %v983_v35  ;;  %v1845_v35 = vrot.slane %v3731_v20, 4 }
  0xb5   :  { %v108_v37 = vpop.permute.xlu1 %107  ;;  %v105_v47 = vpop.permute.xlu0 %104  ;;  %v5002_v25 = vrot.slane %v3648_v50, 3 }
  0xb6   :  { %vm170_vm8 = vcmp.eq.s32.totalorder %v3641_v43, %v108_v37  ;;  %vm169_vm9 = vcmp.eq.s32.totalorder %v3641_v43, %v105_v47  ;;  %v294_v4 = vsel %vm291_vm5, %v285_v55, %v286_v40  ;;  %v293_v14 = vsel %vm291_vm5, %v286_v40, %v287_v36 }
  0xb7   :  { %v3947_v59 = vsel %vm170_vm8, 1.0, %v3467_v49  ;;  %v3950_v2 = vsel %vm169_vm9, 1.0, %v3467_v49  ;;  %3154 = vmatprep.mubr.msk.f32.mxu1 %vm332_vm6, %v294_v4  ;;  %v1417_v37 = vrot.slane %v3728_v19, 3  ;;  %v1846_v4 = vrot.slane %v3728_v19, 4 }
  0xb8   :  { %v273_v27 = vrot.slane %v3947_v59, 1  ;;  %v272_v55 = vrot.slane %v3950_v2, 1  ;;  %3155 = vmatmul.mubr.msk.f32.gmra.mxu1 %vm332_vm6, %v293_v14  ;;  %v1427_v44 = vrot.slane %v3947_v59, 3 }
  0xb9   :  { %v111_v40 = vpop.permute.xlu1 %110  ;;  %v153_v47 = vpop.permute.xlu0 %152 }
  0xba   :  { %vm171_vm12 = vcmp.eq.s32.totalorder %v3641_v43, %v111_v40  ;;  %vm185_vm13 = vcmp.eq.s32.totalorder %v3641_v43, %v153_v47  ;;  %v308_v7 = vsel %vm291_vm5, %v271_v6, %v272_v55  ;;  %v307_v13 = vsel %vm291_vm5, %v272_v55, %v273_v27 }
  0xbb   :  { %v3978_v29 = vsel %vm171_vm12, 1.0, %v3467_v49  ;;  %v3981_v14 = vsel %vm185_vm13, 1.0, %v3467_v49  ;;  %3133 = vmatprep.mubr.msk.f32.mxu0 %vm332_vm6, %v308_v7  ;;  %v3995_v43 = vsel %vm1014_vm3, %v986_v39, %v4982_v17  ;;  %v1848_v49 = vrot.slane %v3782_v41, 4 }
  0xbc   :  { %v274_v40 = vrot.slane %v3978_v29, 1  ;;  %v1418_v6 = vrot.slane %v3785_v42, 3  ;;  %v1847_v55 = vrot.slane %v3785_v42, 4  ;;  %v288_v47 = vrot.slane %v3981_v14, 1  ;;  %3134 = vmatmul.mubr.msk.f32.gmra.mxu0 %vm332_vm6, %v307_v13 }
  0xbd   :  { %v1850_v7 = vrot.slane %v3832_v11, 4  ;;  %v1420_v17 = vrot.slane %v3835_v12, 3 }
  0xbe   :  { %v306_v1 = vsel %vm291_vm5, %v273_v27, %v274_v40  ;;  %v305_v39 = vsel %vm291_vm5, %v274_v40, %v275_v15  ;;  %v292_v13 = vsel %vm291_vm5, %v287_v36, %v288_v47  ;;  %v323_v33 = vsel %vm291_vm5, %v288_v47, %v257_v58 }
  0xbf   :  { %3136 = vmatprep.mubr.msk.f32.mxu0 %vm332_vm6, %v306_v1  ;;  %v1423_v27 = vrot.slane %v3866_v34, 3  ;;  %v1422_v15 = vrot.slane %v3869_v31, 3  ;;  %v1851_v40 = vrot.slane %v3869_v31, 4  ;;  %3157 = vmatprep.mubr.msk.f32.mxu1 %vm332_vm6, %v292_v13  ;;  %v1425_v1 = vrot.slane %v3898_v63, 3 }
  0xc0   :  { %3137 = vmatmul.mubr.msk.f32.gmra.mxu0 %vm332_vm6, %v305_v39  ;;  %3158 = vmatmul.mubr.msk.f32.gmra.mxu1 %vm332_vm6, %v323_v33  ;;  %v4999_v58 = vrot.slane %v3659_v53, 4  ;;  %v5000_v36 = vrot.slane %v3651_v51, 4  ;;  %v5003_v13 = vrot.slane %v3659_v53, 3  ;;  %v1424_v39 = vrot.slane %v3901_v0, 3 }
  0xc1   :  { %v1853_v33 = vrot.slane %v3901_v0, 4  ;;  %3174 = vmatprep.mubr.msk.f32.mxu1 %vm332_vm6, %v3651_v51  ;;  %3236 = vmatprep.mubr.msk.f32.mxu0 %vm332_vm6, %v1045_v28  ;;  %v5010_v28 = vrot.slane %v3669_v60, 4  ;;  %vm2548_vm5 = vcmask 1041409  }
  0xc2   :  { %v4034_v47 = vsel %vm1872_vm10, %v5000_v36, %v4999_v58  ;;  %v4042_v26 = vsel %vm1443_vm11, %v5003_v13, %v5002_v25  ;;  %v5005_v58 = vrot.slane %v3648_v50, 4  ;;  %v5006_v36 = vrot.slane %v3659_v53, 4 }
  0xc3   :  { %5001 = vst [vmem:[#allocation11_spill] sm:$0xff] %v4034_v47  ;;  %5004 = vst [vmem:[#allocation12_spill] sm:$0xff] %v4042_v26  ;;  %v1856_v25 = vrot.slane %v3947_v59, 4  ;;  %v1426_v13 = vrot.slane %v3950_v2, 3  ;;  %v5008_v26 = vrot.slane %v3669_v60, 3  ;;  %v4070_v23 = vsel %vm1872_vm10, %v5010_v28, %v1845_v35 }
  0xc4   :  { %v4056_v47 = vsel %vm1872_vm10, %v5006_v36, %v5005_v58  ;;  %v4074_v58 = vsel %vm1443_vm11, %v1416_v16, %v1417_v37  ;;  %v4078_v36 = vsel %vm1872_vm10, %v1845_v35, %v1846_v4  ;;  %3175 = vmatmul.mubr.msk.f32.vlgmr.msra.gmra.mxu1 %vm332_vm6, %v3659_v53  ;;  %3237 = vmatmul.mubr.msk.f32.vlgmr.msra.gmra.mxu0 %vm332_vm6, %v1044_v10  ;;  %v1428_v10 = vrot.slane %v3978_v29, 3 }
  0xc5   :  { %5007 = vst [vmem:[#allocation13_spill] sm:$0xff] %v4056_v47  ;;  %v4064_v45 = vsel %vm1443_vm11, %v5008_v26, %v1416_v16  ;;  %v4082_v47 = vsel %vm1443_vm11, %v1417_v37, %v1418_v6  ;;  %v4086_v26 = vsel %vm1872_vm10, %v1846_v4, %v1847_v55  ;;  %v2816_v16 = vld [vmem:[%s4973_s1 + $0xd0] sm:$0xff]  ;;  %v2856_v37 = vld [vmem:[%s4973_s1 + $0x108] sm:$0xff]  ;;  %v4100_v35 = vsel %vm1443_vm11, %v1418_v6, %v1419_v57 }
  0xc6   :  { %5009 = vst [vmem:[#allocation14_spill] sm:$0xff] %v4064_v45  ;;  %v1855_v45 = vrot.slane %v3950_v2, 4  ;;  %v4104_v4 = vsel %vm1872_vm10, %v1847_v55, %v1848_v49  ;;  %v4108_v53 = vsel %vm1443_vm11, %v1419_v57, %v1420_v17  ;;  %3285 = vmatpush3.msk.msra.mxu1 %vm429_vm0, %v3825_v3  ;;  %3177 = vmatprep.mubr.msk.f32.mxu1 %vm332_vm6, %v3648_v50  ;;  %v1857_v28 = vrot.slane %v3978_v29, 4 }
  0xc7   :  { %v4117_v6 = vsel %vm1872_vm10, %v1848_v49, %v1849_v21  ;;  %v4121_v55 = vsel %vm1443_vm11, %v1420_v17, %v1421_v22  ;;  %v4125_v57 = vsel %vm1872_vm10, %v1849_v21, %v1850_v7  ;;  %3239 = vmatprep.mubr.msk.f32.mxu0 %vm332_vm6, %v3939_v48  ;;  %3347 = vmatpush3.msk.msra.mxu0 %vm429_vm0, %v3799_v54  ;;  %v988_v49 = vrot.slane %v3728_v19, 2 }
  0xc8   :  { %v4134_v3 = vsel %vm1443_vm11, %v1421_v22, %v1422_v15  ;;  %v4138_v17 = vsel %vm1872_vm10, %v1850_v7, %v1851_v40  ;;  %v4142_v21 = vsel %vm1443_vm11, %v1422_v15, %v1423_v27  ;;  %3286 = vmatprep.subr.mxu1 %v2816_v16  ;;  %3348 = vmatprep.subr.mxu0 %v2856_v37  ;;  %v989_v7 = vrot.slane %v3785_v42, 2  ;;  %v2815_v15 = vld [vmem:[%s4973_s1 + $0xc8] sm:$0xff] }
  0xc9   :  { %v4147_v48 = vsel %vm1872_vm10, %v1851_v40, %v1852_v38  ;;  %v4151_v54 = vsel %vm1443_vm11, %v1423_v27, %v1424_v39  ;;  %v4155_v22 = vsel %vm1872_vm10, %v1852_v38, %v1853_v33  ;;  %3178 = vmatmul.mubr.msk.f32.gmra.mxu1 %vm332_vm6, %v3656_v52  ;;  %3240 = vmatmul.mubr.msk.f32.gmra.mxu0 %vm332_vm6, %v3971_v56  ;;  %v2855_v27 = vld [vmem:[%s4973_s1 + $0x100] sm:$0xff]  ;;  %vm2374_vm0 = vcmask 392192  }
  0xca   :  { %5011 = vst [vmem:[#allocation15_spill] sm:$0xff] %v4155_v22  ;;  %v4170_v38 = vsel %vm1443_vm11, %v1424_v39, %v1425_v1  ;;  %v4174_v40 = vsel %vm1872_vm10, %v1853_v33, %v1854_v18  ;;  %v4178_v22 = vsel %vm1443_vm11, %v1425_v1, %v1426_v13  ;;  %3180 = vmatprep.mubr.msk.f32.mxu1 %vm332_vm6, %v3669_v60 }
  0xcb   :  { %3242 = vmatprep.mubr.msk.f32.mxu0 %vm332_vm6, %v3995_v43  ;;  %v4187_v39 = vsel %vm1872_vm10, %v1854_v18, %v1855_v45  ;;  %v4191_v33 = vsel %vm1443_vm11, %v1426_v13, %v1427_v44  ;;  %v4195_v1 = vsel %vm1872_vm10, %v1855_v45, %v1856_v25  ;;  %3287 = vmatpush3.msra.mxu1 %v2816_v16  ;;  %v5013_v18 = vrot.slane %v3687_v5, 3 }
  0xcc   :  { %5012 = vst [vmem:[#allocation16_spill] sm:$0xff] %v4191_v33  ;;  %3349 = vmatpush3.msra.mxu0 %v2856_v37  ;;  %v4199_v56 = vsel %vm1443_vm11, %v1427_v44, %v1428_v10  ;;  %v4203_v43 = vsel %vm1872_vm10, %v1856_v25, %v1857_v28  ;;  %v990_v33 = vrot.slane %v3782_v41, 2  ;;  %v5014_v45 = vrot.slane %v3731_v20, 2  ;;  %3288 = vmatprep.subr.mxu1 %v2815_v15 }
  0xcd   :  { %v4209_v13 = vsel %vm1443_vm11, %v1428_v10, %v5013_v18  ;;  %3350 = vmatprep.subr.mxu0 %v2855_v27  ;;  %v5015_v44 = vrot.slane %v3687_v5, 4  ;;  %v991_v37 = vrot.slane %v3835_v12, 2  ;;  %3181 = vmatmul.mubr.msk.f32.gmra.mxu1 %vm332_vm6, %v3731_v20  ;;  %v1039_v10 = vsel %vm1014_vm3, %v988_v49, %v989_v7  ;;  %v2814_v18 = vld [vmem:[%s4973_s1 + $0xc0] sm:$0xff] }
  0xce   :  { %v1040_v16 = vsel %vm1014_vm3, %v5014_v45, %v988_v49  ;;  %v2854_v45 = vld [vmem:[%s4973_s1 + $0xf8] sm:$0xff]  ;;  %3183 = vmatprep.mubr.msk.f32.mxu1 %vm332_vm6, %v3728_v19  ;;  %3289 = vmatpush3.msra.mxu1 %v2815_v15  ;;  %v992_v20 = vrot.slane %v3832_v11, 2  ;;  %v993_v49 = vrot.slane %v3869_v31, 2  ;;  %v2853_v15 = vld [vmem:[%s4973_s1 + $0xf0] sm:$0xff] }
  0xcf   :  { %v4220_v25 = vsel %vm1872_vm10, %v1857_v28, %v5015_v44  ;;  %3243 = vmatmul.mubr.msk.f32.gmra.mxu0 %vm332_vm6, %v1040_v16  ;;  %v1038_v28 = vsel %vm1014_vm3, %v989_v7, %v990_v33  ;;  %3290 = vmatprep.subr.mxu1 %v2814_v18  ;;  %v1442_v16 = vrot.slane %v3981_v14, 3  ;;  %v1871_v44 = vrot.slane %v3981_v14, 4  ;;  %v2813_v7 = vld [vmem:[%s4973_s1 + $0xb8] sm:$0xff] }
  0xd0   :  { %3245 = vmatprep.mubr.msk.f32.mxu0 %vm332_vm6, %v1039_v10  ;;  %3351 = vmatpush3.msra.mxu0 %v2855_v27  ;;  %v1037_v19 = vsel %vm1014_vm3, %v990_v33, %v991_v37  ;;  %v1036_v27 = vsel %vm1014_vm3, %v991_v37, %v992_v20  ;;  %v995_v33 = vrot.slane %v3901_v0, 2  ;;  %v2812_v10 = vld [vmem:[%s4973_s1 + $0xb0] sm:$0xff]  ;;  %v2852_v37 = vld [vmem:[%s4973_s1 + $0xe8] sm:$0xff] }
  0xd1   :  { %3352 = vmatprep.subr.mxu0 %v2854_v45  ;;  %3184 = vmatmul.mubr.msk.f32.gmra.mxu1 %vm332_vm6, %v3785_v42  ;;  %v994_v42 = vrot.slane %v3866_v34, 2 }
  0xd2   :  { %3186 = vmatprep.mubr.msk.f32.mxu1 %vm332_vm6, %v3782_v41  ;;  %3291 = vmatpush3.msra.mxu1 %v2814_v18  ;;  %v1035_v41 = vsel %vm1014_vm3, %v992_v20, %v993_v49  ;;  %v5016_v18 = vrot.slane %v3651_v51, 3 }
  0xd3   :  { %3246 = vmatmul.mubr.msk.f32.gmra.mxu0 %vm332_vm6, %v1038_v28  ;;  %3292 = vmatprep.subr.mxu1 %v2813_v7  ;;  %v996_v28 = vrot.slane %v3898_v63, 2 }
  0xd4   :  { %3248 = vmatprep.mubr.msk.f32.mxu0 %vm332_vm6, %v1037_v19  ;;  %3353 = vmatpush3.msra.mxu0 %v2854_v45  ;;  %v5017_v45 = vrot.slane %v3651_v51, 4  ;;  %v1034_v19 = vsel %vm1014_vm3, %v993_v49, %v994_v42  ;;  %v2851_v49 = vld [vmem:[%s4973_s1 + $0xe0] sm:$0xff] }
  0xd5   :  { %3354 = vmatprep.subr.mxu0 %v2853_v15  ;;  %3187 = vmatmul.mubr.msk.f32.gmra.mxu1 %vm332_vm6, %v3835_v12  ;;  %v4278_v12 = vsel %vm1443_vm11, %v1442_v16, %v5016_v18  ;;  %v1003_v18 = vrot.slane %v3760_v32, 2 }
  0xd6   :  { %v4286_v20 = vsel %vm1872_vm10, %v1871_v44, %v5017_v45  ;;  %3189 = vmatprep.mubr.msk.f32.mxu1 %vm332_vm6, %v3832_v11  ;;  %3293 = vmatpush3.msra.mxu1 %v2813_v7  ;;  %v1033_v11 = vsel %vm1014_vm3, %v994_v42, %v995_v33  ;;  %v2811_v7 = vld [vmem:[%s4973_s1 + $0xa8] sm:$0xff]  ;;  %v999_v42 = vrot.slane %v3978_v29, 2 }
  0xd7   :  { %3249 = vmatmul.mubr.msk.f32.gmra.mxu0 %vm332_vm6, %v1036_v27  ;;  %3294 = vmatprep.subr.mxu1 %v2812_v10  ;;  %v997_v27 = vrot.slane %v3950_v2, 2 }
  0xd8   :  { %3251 = vmatprep.mubr.msk.f32.mxu0 %vm332_vm6, %v1035_v41  ;;  %3355 = vmatpush3.msra.mxu0 %v2853_v15  ;;  %v1032_v15 = vsel %vm1014_vm3, %v995_v33, %v996_v28  ;;  %v1001_v41 = vrot.slane %v3703_v9, 2 }
  0xd9   :  { %3356 = vmatprep.subr.mxu0 %v2852_v37  ;;  %3190 = vmatmul.mubr.msk.f32.gmra.mxu1 %vm332_vm6, %v3869_v31  ;;  %v998_v31 = vrot.slane %v3947_v59, 2 }
  0xda   :  { %3192 = vmatprep.mubr.msk.f32.mxu1 %vm332_vm6, %v3866_v34  ;;  %3295 = vmatpush3.msra.mxu1 %v2812_v10  ;;  %v1031_v34 = vsel %vm1014_vm3, %v996_v28, %v997_v27  ;;  %v1000_v10 = vrot.slane %v3687_v5, 2  ;;  %v1005_v28 = vrot.slane %v3812_v62, 2 }
  0xdb   :  { %3252 = vmatmul.mubr.msk.f32.gmra.mxu0 %vm332_vm6, %v1034_v19  ;;  %3296 = vmatprep.subr.mxu1 %v2811_v7  ;;  %v1030_v33 = vsel %vm1014_vm3, %v997_v27, %v998_v31  ;;  %v1006_v19 = vrot.slane %v3809_v61, 2 }
  0xdc   :  { %3254 = vmatprep.mubr.msk.f32.mxu0 %vm332_vm6, %v1033_v11  ;;  %3357 = vmatpush3.msra.mxu0 %v2852_v37  ;;  %v1028_v37 = vsel %vm1014_vm3, %v999_v42, %v1000_v10  ;;  %v1007_v11 = vrot.slane %v3853_v24, 2 }
  0xdd   :  { %3358 = vmatprep.subr.mxu0 %v2851_v49  ;;  %3193 = vmatmul.mubr.msk.f32.gmra.mxu1 %vm332_vm6, %v3901_v0  ;;  %v1029_v0 = vsel %vm1014_vm3, %v998_v31, %v999_v42  ;;  %v5019_v42 = vld [vmem:[#allocation8_spill] sm:$0xff] }
  0xde   :  { %3195 = vmatprep.mubr.msk.f32.mxu1 %vm332_vm6, %v3898_v63  ;;  %3297 = vmatpush3.msra.mxu1 %v2811_v7  ;;  %v1002_v63 = vrot.slane %v3700_v8, 2 }
  0xdf   :  { %3255 = vmatmul.mubr.msk.f32.gmra.mxu0 %vm332_vm6, %v1032_v15  ;;  %v1022_v15 = vsel %vm1014_vm3, %v1005_v28, %v1006_v19 }
  0xe0   :  { %3257 = vmatprep.mubr.msk.f32.mxu0 %vm332_vm6, %v1031_v34  ;;  %3359 = vmatpush3.msra.mxu0 %v2851_v49  ;;  %v1026_v45 = vsel %vm1014_vm3, %v1001_v41, %v1002_v63  ;;  %v5018_v49 = vld [vmem:[#allocation6_spill] sm:$0xff]  ;;  %v1009_v34 = vrot.slane %v5019_v42, 2 }
  0xe1   :  { %3196 = vmatmul.mubr.msk.f32.gmra.mxu1 %vm332_vm6, %v3950_v2  ;;  %v1027_v2 = vsel %vm1014_vm3, %v1000_v10, %v1001_v41  ;;  %v1008_v31 = vrot.slane %v5018_v49, 2  ;;  %v5020_v41 = vld [vmem:[#allocation7_spill] sm:$0xff] }
  0xe2   :  { %3198 = vmatprep.mubr.msk.f32.mxu1 %vm332_vm6, %v3947_v59  ;;  %v1004_v59 = vrot.slane %v3757_v30, 2 }
  0xe3   :  { %3258 = vmatmul.mubr.msk.f32.gmra.mxu0 %vm332_vm6, %v1030_v33  ;;  %v1021_v33 = vsel %vm1014_vm3, %v1006_v19, %v1007_v11  ;;  %v1020_v10 = vsel %vm1014_vm3, %v1007_v11, %v1008_v31  ;;  %v5023_v11 = vrot.slane %v3651_v51, 2  ;;  %v5027_v51 = vld [vmem:[#allocation13_spill] sm:$0xff] }
  0xe4   :  { %3260 = vmatprep.mubr.msk.f32.mxu0 %vm332_vm6, %v1029_v0  ;;  %v1024_v27 = vsel %vm1014_vm3, %v1003_v18, %v1004_v59  ;;  %v1023_v7 = vsel %vm1014_vm3, %v1004_v59, %v1005_v28  ;;  %v1010_v0 = vrot.slane %v5020_v41, 2  ;;  %v1013_v28 = vrot.slane %v3981_v14, 2 }
  0xe5   :  { %3199 = vmatmul.mubr.msk.f32.gmra.mxu1 %vm332_vm6, %v3978_v29  ;;  %v1025_v29 = vsel %vm1014_vm3, %v1002_v63, %v1003_v18  ;;  %v5021_v63 = vld [vmem:[#allocation10_spill] sm:$0xff]  ;;  %v1019_v18 = vsel %vm1014_vm3, %v1008_v31, %v1009_v34  ;;  %v1414_v31 = vrot.slane %v3656_v52, 3 }
  0xe6   :  { %3201 = vmatprep.mubr.msk.f32.mxu1 %vm332_vm6, %v3687_v5 }
  0xe7   :  { %3261 = vmatmul.mubr.msk.f32.gmra.mxu0 %vm332_vm6, %v1028_v37  ;;  %v1011_v37 = vrot.slane %v5021_v63, 2 }
  0xe8   :  { %3263 = vmatprep.mubr.msk.f32.mxu0 %vm332_vm6, %v1027_v2  ;;  %v5022_v2 = vld [vmem:[#allocation9_spill] sm:$0xff] }
  0xe9   :  { %3202 = vmatmul.mubr.msk.f32.gmra.mxu1 %vm332_vm6, %v3703_v9  ;;  %v1012_v59 = vrot.slane %v5022_v2, 2 }
  0xea   :  { %3204 = vmatprep.mubr.msk.f32.mxu1 %vm332_vm6, %v3700_v8 }
  0xeb   :  { %3264 = vmatmul.mubr.msk.f32.gmra.mxu0 %vm332_vm6, %v1026_v45  ;;  %v1018_v45 = vsel %vm1014_vm3, %v1009_v34, %v1010_v0  ;;  %v1016_v19 = vsel %vm1014_vm3, %v1011_v37, %v1012_v59  ;;  %v5024_v34 = vld [vmem:[#allocation5_spill] sm:$0xff] }
  0xec   :  { %3266 = vmatprep.mubr.msk.f32.mxu0 %vm332_vm6, %v1025_v29  ;;  %v1017_v29 = vsel %vm1014_vm3, %v1010_v0, %v1011_v37  ;;  %v5026_v0 = vld [vmem:[#allocation12_spill] sm:$0xff]  ;;  %v5029_v37 = vrot.slane %v3648_v50, 4 }
  0xed   :  { %3205 = vmatmul.mubr.msk.f32.gmra.mxu1 %vm332_vm6, %v3760_v32 }
  0xee   :  { %3207 = vmatprep.mubr.msk.f32.mxu1 %vm332_vm6, %v3757_v30 }
  0xef   :  { %3267 = vmatmul.mubr.msk.f32.gmra.mxu0 %vm332_vm6, %v1024_v27  ;;  %v1015_v27 = vsel %vm1014_vm3, %v1012_v59, %v1013_v28  ;;  %v5030_v59 = vrot.slane %v3669_v60, 3 }
  0xf0   :  { %3269 = vmatprep.mubr.msk.f32.mxu0 %vm332_vm6, %v1023_v7  ;;  %v1046_v7 = vsel %vm1014_vm3, %v1013_v28, %v5023_v11  ;;  %v5031_v28 = vrot.slane %v3669_v60, 4  ;;  %v5033_v60 = vld [vmem:[#allocation15_spill] sm:$0xff]  ;;  %v1868_v11 = vrot.slane %v5020_v41, 4 }
  0xf1   :  { %3208 = vmatmul.mubr.msk.f32.gmra.mxu1 %vm332_vm6, %v3812_v62 }
  0xf2   :  { %3210 = vmatprep.mubr.msk.f32.mxu1 %vm332_vm6, %v3809_v61 }
  0xf3   :  { %3270 = vmatmul.mubr.msk.f32.gmra.mxu0 %vm332_vm6, %v1022_v15  ;;  %v1843_v15 = vrot.slane %v3656_v52, 4 }
  0xf4   :  { %3272 = vmatprep.mubr.msk.f32.mxu0 %vm332_vm6, %v1021_v33  ;;  %v5025_v33 = vld [vmem:[#allocation11_spill] sm:$0xff] }
  0xf5   :  { %3211 = vmatmul.mubr.msk.f32.gmra.mxu1 %vm332_vm6, %v3853_v24 }
  0xf6   :  { %3213 = vmatprep.mubr.msk.f32.mxu1 %vm332_vm6, %v5018_v49 }
  0xf7   :  { %3273 = vmatmul.mubr.msk.f32.gmra.mxu0 %vm332_vm6, %v1020_v10  ;;  %v5028_v10 = vrot.slane %v3648_v50, 3  ;;  %v5032_v50 = vld [vmem:[#allocation14_spill] sm:$0xff] }
  0xf8   :  { %3275 = vmatprep.mubr.msk.f32.mxu0 %vm332_vm6, %v1019_v18  ;;  %v1901_v18 = vsel %vm1872_vm10, %v5029_v37, %v1843_v15 }
  0xf9   :  { %3214 = vmatmul.mubr.msk.f32.gmra.mxu1 %vm332_vm6, %v5019_v42  ;;  %v1472_v52 = vsel %vm1443_vm11, %v5028_v10, %v1414_v31 }
  0xfa   :  { %3216 = vmatprep.mubr.msk.f32.mxu1 %vm332_vm6, %v5020_v41 }
  0xfb   :  { %3276 = vmatmul.mubr.msk.f32.gmra.mxu0 %vm332_vm6, %v1018_v45  ;;  %v1471_v45 = vsel %vm1443_vm11, %v1414_v31, %v5030_v59  ;;  %v1440_v31 = vrot.slane %v5021_v63, 3 }
  0xfc   :  { %3278 = vmatprep.mubr.msk.f32.mxu0 %vm332_vm6, %v1017_v29  ;;  %v1900_v29 = vsel %vm1872_vm10, %v1843_v15, %v5031_v28  ;;  %v1869_v15 = vrot.slane %v5021_v63, 4 }
  0xfd   :  { %3217 = vmatmul.mubr.msk.f32.gmra.mxu1 %vm332_vm6, %v5021_v63 }
  0xfe   :  { %3219 = vmatprep.mubr.msk.f32.mxu1 %vm332_vm6, %v5022_v2 }
  0xff   :  { %3279 = vmatmul.mubr.msk.f32.gmra.mxu0 %vm332_vm6, %v1016_v19 }
 0x100   :  { %3281 = vmatprep.mubr.msk.f32.mxu0 %vm332_vm6, %v1015_v27  ;;  %v1439_v27 = vrot.slane %v5020_v41, 3 }
 0x101   :  { %3220 = vmatmul.mubr.msk.f32.gmra.mxu1 %vm332_vm6, %v3981_v14 }
 0x102   :  { %3298 = vmatprep.mubr.msk.f32.mxu1 %vm332_vm6, %v5024_v34  ;;  %v1446_v10 = vsel %vm1443_vm11, %v1439_v27, %v1440_v31 }
 0x103   :  { %3282 = vmatmul.mubr.msk.f32.gmra.mxu0 %vm332_vm6, %v1046_v7 }
 0x104   :  { %3360 = vmatprep.mubr.msk.f32.mxu0 %vm332_vm6, %v5025_v33  ;;  %v1441_v33 = vrot.slane %v5022_v2, 3 }
 0x105   :  { %3299 = vmatmul.mubr.msk.f32.vlgmr.msra.gmra.mxu1 %vm332_vm6, %v5026_v0  ;;  %v1870_v0 = vrot.slane %v5022_v2, 4 }
 0x106   :  { %3301 = vmatprep.mubr.msk.f32.mxu1 %vm332_vm6, %v1472_v52  ;;  %v1875_v52 = vsel %vm1872_vm10, %v1868_v11, %v1869_v15  ;;  %v1445_v2 = vsel %vm1443_vm11, %v1440_v31, %v1441_v33 }
 0x107   :  { %3361 = vmatmul.mubr.msk.f32.vlgmr.msra.gmra.mxu0 %vm332_vm6, %v5027_v51  ;;  %v1874_v37 = vsel %vm1872_vm10, %v1869_v15, %v1870_v0  ;;  %v1873_v59 = vsel %vm1872_vm10, %v1870_v0, %v1871_v44 }
 0x108   :  { %3363 = vmatprep.mubr.msk.f32.mxu0 %vm332_vm6, %v1901_v18  ;;  %v1444_v18 = vsel %vm1443_vm11, %v1441_v33, %v1442_v16 }
 0x109   :  { %3302 = vmatmul.mubr.msk.f32.gmra.mxu1 %vm332_vm6, %v1471_v45 }
 0x10a   :  { %3304 = vmatprep.mubr.msk.f32.mxu1 %vm332_vm6, %v5032_v50 }
 0x10b   :  { %3364 = vmatmul.mubr.msk.f32.gmra.mxu0 %vm332_vm6, %v1900_v29 }
 0x10c   :  { %3366 = vmatprep.mubr.msk.f32.mxu0 %vm332_vm6, %v4070_v23  ;;  %v1430_v23 = vrot.slane %v3703_v9, 3 }
 0x10d   :  { %3305 = vmatmul.mubr.msk.f32.gmra.mxu1 %vm332_vm6, %v4074_v58  ;;  %v5034_v58 = vld [vmem:[#allocation16_spill] sm:$0xff] }
 0x10e   :  { %3307 = vmatprep.mubr.msk.f32.mxu1 %vm332_vm6, %v4082_v47  ;;  %v1859_v47 = vrot.slane %v3703_v9, 4  ;;  %v1861_v9 = vrot.slane %v3760_v32, 4 }
 0x10f   :  { %3367 = vmatmul.mubr.msk.f32.gmra.mxu0 %vm332_vm6, %v4078_v36  ;;  %v1431_v36 = vrot.slane %v3700_v8, 3 }
 0x110   :  { %3369 = vmatprep.mubr.msk.f32.mxu0 %vm332_vm6, %v4086_v26  ;;  %v1860_v26 = vrot.slane %v3700_v8, 4 }
 0x111   :  { %3308 = vmatmul.mubr.msk.f32.gmra.mxu1 %vm332_vm6, %v4100_v35  ;;  %v1432_v35 = vrot.slane %v3760_v32, 3  ;;  %v1433_v32 = vrot.slane %v3757_v30, 3 }
 0x112   :  { %3310 = vmatprep.mubr.msk.f32.mxu1 %vm332_vm6, %v4108_v53 }
 0x113   :  { %3370 = vmatmul.mubr.msk.f32.gmra.mxu0 %vm332_vm6, %v4104_v4  ;;  %v5035_v4 = vrot.slane %v3687_v5, 3 }
 0x114   :  { %3372 = vmatprep.mubr.msk.f32.mxu0 %vm332_vm6, %v4117_v6  ;;  %v5036_v6 = vrot.slane %v3687_v5, 4  ;;  %v1863_v5 = vrot.slane %v3812_v62, 4 }
 0x115   :  { %3311 = vmatmul.mubr.msk.f32.gmra.mxu1 %vm332_vm6, %v4121_v55  ;;  %v1456_v53 = vsel %vm1443_vm11, %v5035_v4, %v1430_v23  ;;  %v1862_v55 = vrot.slane %v3757_v30, 4  ;;  %v1883_v30 = vsel %vm1872_vm10, %v1860_v26, %v1861_v9 }
 0x116   :  { %3313 = vmatprep.mubr.msk.f32.mxu1 %vm332_vm6, %v4134_v3  ;;  %v1885_v8 = vsel %vm1872_vm10, %v5036_v6, %v1859_v47  ;;  %v1884_v3 = vsel %vm1872_vm10, %v1859_v47, %v1860_v26 }
 0x117   :  { %3373 = vmatmul.mubr.msk.f32.gmra.mxu0 %vm332_vm6, %v4125_v57  ;;  %v1455_v57 = vsel %vm1443_vm11, %v1430_v23, %v1431_v36 }
 0x118   :  { %3375 = vmatprep.mubr.msk.f32.mxu0 %vm332_vm6, %v4138_v17  ;;  %v1434_v17 = vrot.slane %v3812_v62, 3  ;;  %v1453_v62 = vsel %vm1443_vm11, %v1432_v35, %v1433_v32 }
 0x119   :  { %3314 = vmatmul.mubr.msk.f32.gmra.mxu1 %vm332_vm6, %v4142_v21  ;;  %v1454_v21 = vsel %vm1443_vm11, %v1431_v36, %v1432_v35 }
 0x11a   :  { %3316 = vmatprep.mubr.msk.f32.mxu1 %vm332_vm6, %v4151_v54  ;;  %v1864_v54 = vrot.slane %v3809_v61, 4 }
 0x11b   :  { %3376 = vmatmul.mubr.msk.f32.gmra.mxu0 %vm332_vm6, %v4147_v48  ;;  %v1435_v48 = vrot.slane %v3809_v61, 3  ;;  %v1881_v61 = vsel %vm1872_vm10, %v1862_v55, %v1863_v5 }
 0x11c   :  { %3378 = vmatprep.mubr.msk.f32.mxu0 %vm332_vm6, %v5033_v60 }
 0x11d   :  { %3317 = vmatmul.mubr.msk.f32.gmra.mxu1 %vm332_vm6, %v4170_v38  ;;  %v1436_v38 = vrot.slane %v3853_v24, 3 }
 0x11e   :  { %3319 = vmatprep.mubr.msk.f32.mxu1 %vm332_vm6, %v4178_v22  ;;  %v1882_v22 = vsel %vm1872_vm10, %v1861_v9, %v1862_v55 }
 0x11f   :  { %3379 = vmatmul.mubr.msk.f32.gmra.mxu0 %vm332_vm6, %v4174_v40  ;;  %v1865_v40 = vrot.slane %v3853_v24, 4  ;;  %v1451_v24 = vsel %vm1443_vm11, %v1434_v17, %v1435_v48  ;;  %v1450_v19 = vsel %vm1443_vm11, %v1435_v48, %v1436_v38 }
 0x120   :  { %3381 = vmatprep.mubr.msk.f32.mxu0 %vm332_vm6, %v4187_v39  ;;  %v1437_v39 = vrot.slane %v5018_v49, 3 }
 0x121   :  { %3320 = vmatmul.mubr.msk.f32.gmra.mxu1 %vm332_vm6, %v5034_v58 }
 0x122   :  { %3322 = vmatprep.mubr.msk.f32.mxu1 %vm332_vm6, %v4199_v56  ;;  %v1452_v56 = vsel %vm1443_vm11, %v1433_v32, %v1434_v17 }
 0x123   :  { %3382 = vmatmul.mubr.msk.f32.gmra.mxu0 %vm332_vm6, %v4195_v1  ;;  %v1866_v1 = vrot.slane %v5018_v49, 4  ;;  %v1879_v49 = vsel %vm1872_vm10, %v1864_v54, %v1865_v40 }
 0x124   :  { %3384 = vmatprep.mubr.msk.f32.mxu0 %vm332_vm6, %v4203_v43  ;;  %v1880_v43 = vsel %vm1872_vm10, %v1863_v5, %v1864_v54 }
 0x125   :  { %3323 = vmatmul.mubr.msk.f32.gmra.mxu1 %vm332_vm6, %v4209_v13  ;;  %v1438_v13 = vrot.slane %v5019_v42, 3  ;;  %v1878_v7 = vsel %vm1872_vm10, %v1865_v40, %v1866_v1 }
 0x126   :  { %3325 = vmatprep.mubr.msk.f32.mxu1 %vm332_vm6, %v1456_v53  ;;  %v2524_v53 = vld [vmem:[%s4976_s4 + $0x28] sm:$0xff] }
 0x127   :  { %3385 = vmatmul.mubr.msk.f32.gmra.mxu0 %vm332_vm6, %v4220_v25  ;;  %v1867_v25 = vrot.slane %v5019_v42, 4  ;;  %v1449_v42 = vsel %vm1443_vm11, %v1436_v38, %v1437_v39  ;;  %v1448_v34 = vsel %vm1443_vm11, %v1437_v39, %v1438_v13  ;;  %v1447_v63 = vsel %vm1443_vm11, %v1438_v13, %v1439_v27  ;;  %3408 = vmatprep.subr.mxu1 %v2524_v53 }
 0x128   :  { %3387 = vmatprep.mubr.msk.f32.mxu0 %vm332_vm6, %v1885_v8  ;;  %3409 = vmatpush3.msra.mxu1 %v2524_v53  ;;  %vm2552_vm11 = vcmask 1043459  }
 0x129   :  { %3326 = vmatmul.mubr.msk.f32.gmra.mxu1 %vm332_vm6, %v1455_v57  ;;  %v1877_v41 = vsel %vm1872_vm10, %v1866_v1, %v1867_v25  ;;  %v1876_v51 = vsel %vm1872_vm10, %v1867_v25, %v1868_v11 }
 0x12a   :  { %3328 = vmatprep.mubr.msk.f32.mxu1 %vm332_vm6, %v1454_v21 }
 0x12b   :  { %3388 = vmatmul.mubr.msk.f32.gmra.mxu0 %vm332_vm6, %v1884_v3 }
 0x12c   :  { %3390 = vmatprep.mubr.msk.f32.mxu0 %vm332_vm6, %v1883_v30 }
 0x12d   :  { %3329 = vmatmul.mubr.msk.f32.gmra.mxu1 %vm332_vm6, %v1453_v62 }
 0x12e   :  { %3331 = vmatprep.mubr.msk.f32.mxu1 %vm332_vm6, %v1452_v56 }
 0x12f   :  { %3391 = vmatmul.mubr.msk.f32.gmra.mxu0 %vm332_vm6, %v1882_v22  ;;  %v2523_v22 = vld [vmem:[%s4976_s4 + $0x20] sm:$0xff] }
 0x130   :  { %3393 = vmatprep.mubr.msk.f32.mxu0 %vm332_vm6, %v1881_v61  ;;  %3410 = vmatprep.subr.mxu1 %v2523_v22 }
 0x131   :  { %3332 = vmatmul.mubr.msk.f32.gmra.mxu1 %vm332_vm6, %v1451_v24 }
 0x132   :  { %3334 = vmatprep.mubr.msk.f32.mxu1 %vm332_vm6, %v1450_v19  ;;  %3411 = vmatpush3.msra.mxu1 %v2523_v22 }
 0x133   :  { %3394 = vmatmul.mubr.msk.f32.gmra.mxu0 %vm332_vm6, %v1880_v43 }
 0x134   :  { %3396 = vmatprep.mubr.msk.f32.mxu0 %vm332_vm6, %v1879_v49 }
 0x135   :  { %3335 = vmatmul.mubr.msk.f32.gmra.mxu1 %vm332_vm6, %v1449_v42 }
 0x136   :  { %3337 = vmatprep.mubr.msk.f32.mxu1 %vm332_vm6, %v1448_v34 }
 0x137   :  { %3397 = vmatmul.mubr.msk.f32.gmra.mxu0 %vm332_vm6, %v1878_v7 }
 0x138   :  { %3399 = vmatprep.mubr.msk.f32.mxu0 %vm332_vm6, %v1877_v41 }
 0x139   :  { %3338 = vmatmul.mubr.msk.f32.gmra.mxu1 %vm332_vm6, %v1447_v63 }
 0x13a   :  { %3340 = vmatprep.mubr.msk.f32.mxu1 %vm332_vm6, %v1446_v10 }
 0x13b   :  { %3400 = vmatmul.mubr.msk.f32.gmra.mxu0 %vm332_vm6, %v1876_v51  ;;  %v2522_v51 = vld [vmem:[%s4976_s4 + $0x18] sm:$0xff] }
 0x13c   :  { %3402 = vmatprep.mubr.msk.f32.mxu0 %vm332_vm6, %v1875_v52  ;;  %3412 = vmatprep.subr.mxu1 %v2522_v51 }
 0x13d   :  { %3341 = vmatmul.mubr.msk.f32.gmra.mxu1 %vm332_vm6, %v1445_v2 }
 0x13e   :  { %3343 = vmatprep.mubr.msk.f32.mxu1 %vm332_vm6, %v1444_v18  ;;  %3413 = vmatpush3.msra.mxu1 %v2522_v51 }
 0x13f   :  { %3403 = vmatmul.mubr.msk.f32.gmra.mxu0 %vm332_vm6, %v1874_v37 }
 0x140   :  { %3405 = vmatprep.mubr.msk.f32.mxu0 %vm332_vm6, %v1873_v59 }
 0x141   :  { %3344 = vmatmul.mubr.msk.f32.gmra.mxu1 %vm332_vm6, %v4278_v12 }
 0x143   :  { %3406 = vmatmul.mubr.msk.f32.gmra.mxu0 %vm332_vm6, %v4286_v20  ;;  %vm2550_vm6 = vcmask 1042434  }
 0x148   :  { %v3114_v45 = vpop.f32.mrf.mxu0 }
 0x14a   :  { %v499_v28 = vpop.f32.mrf.mxu0 }
 0x14c   :  { %v3117_v29 = vpop.f32.mrf.mxu0 }
 0x14e   :  { %v509_v50 = vpop.f32.mrf.mxu0 }
 0x150   :  { %v4622_v16 = vpop.f32.mrf.mxu1 }
 0x152   :  { %v4624_v60 = vpop.f32.mrf.mxu1 }
 0x154   :  { %v3120_v14 = vpop.f32.mrf.mxu0 }
 0x156   :  { %v519_v46 = vpop.f32.mrf.mxu0 }
 0x159   :  { %v4626_v44 = vpop.f32.mrf.mxu1 }
 0x15b   :  { %v4628_v47 = vpop.f32.mrf.mxu1 }
 0x15d   :  { %v3123_v23 = vpop.f32.mrf.mxu0 }
 0x15f   :  { %v529_v58 = vpop.f32.mrf.mxu0 }
 0x160   :  { %v4630_v12 = vpop.f32.mrf.mxu1 }
 0x162   :  { %v4632_v20 = vpop.f32.mrf.mxu1 }
 0x164   :  { %v3126_v36 = vpop.f32.mrf.mxu0 }
 0x166   :  { %v4634_v26 = vpop.f32.mrf.mxu0 }
 0x168   :  { %v4636_v35 = vpop.f32.mrf.mxu1 }
 0x16a   :  { %v4640_v4 = vpop.f32.mrf.mxu1 }
 0x16c   :  { %v4638_v9 = vpop.f32.mrf.mxu0 }
 0x16e   :  { %v4645_v6 = vpop.f32.mrf.mxu0 }
 0x170   :  { %v4647_v8 = vpop.f32.mrf.mxu1 }
 0x172   :  { %v4651_v55 = vpop.f32.mrf.mxu1 }
 0x174   :  { %v4649_v32 = vpop.f32.mrf.mxu0 }
 0x176   :  { %v4653_v57 = vpop.f32.mrf.mxu0 }
 0x178   :  { %v4655_v3 = vpop.f32.mrf.mxu1 }
 0x17a   :  { %v4659_v5 = vpop.f32.mrf.mxu1 }
 0x17c   :  { %v4657_v17 = vpop.f32.mrf.mxu0 }
 0x17e   :  { %v4661_v21 = vpop.f32.mrf.mxu0 }
 0x180   :  { %v4663_v30 = vpop.f32.mrf.mxu0  ;;  %v4665_v48 = vpop.f32.mrf.mxu1 }
 0x182   :  { %v4667_v54 = vpop.f32.mrf.mxu0  ;;  %v4669_v62 = vpop.f32.mrf.mxu1 }
 0x184   :  { %v3176_v38 = vpop.f32.mrf.mxu1  ;;  %v3238_v40 = vpop.f32.mrf.mxu0 }
 0x185   :  { %v829_v56 = vadd.f32 %v3176_v38, %v3114_v45 }
 0x186   :  { %v823_v61 = vpop.f32.mrf.mxu1  ;;  %v1220_v39 = vpop.f32.mrf.mxu0 }
 0x187   :  { %v4674_v1 = vadd.f32 %v3238_v40, %v829_v56  ;;  %v824_v24 = vadd.f32 %v823_v61, %v499_v28 }
 0x189   :  { %v3179_v43 = vpop.f32.mrf.mxu1  ;;  %v3241_v13 = vpop.f32.mrf.mxu0  ;;  %v4676_v25 = vadd.f32 %v1220_v39, %v824_v24 }
 0x18a   :  { %v839_v19 = vadd.f32 %v3179_v43, %v3117_v29 }
 0x18b   :  { %v833_v49 = vpop.f32.mrf.mxu1  ;;  %v1230_v27 = vpop.f32.mrf.mxu0 }
 0x18c   :  { %v4678_v11 = vadd.f32 %v3241_v13, %v839_v19  ;;  %v834_v42 = vadd.f32 %v833_v49, %v509_v50 }
 0x18d   :  { %v3182_v7 = vpop.f32.mrf.mxu1 }
 0x18e   :  { %v4680_v15 = vadd.f32 %v1230_v27, %v834_v42  ;;  %v849_v34 = vadd.f32 %v3182_v7, %v3120_v14 }
 0x18f   :  { %v3244_v31 = vpop.f32.mrf.mxu0  ;;  %v843_v41 = vpop.f32.mrf.mxu1 }
 0x190   :  { %v4682_v0 = vadd.f32 %v3244_v31, %v849_v34  ;;  %v844_v63 = vadd.f32 %v843_v41, %v519_v46 }
 0x191   :  { %v1240_v33 = vpop.f32.mrf.mxu0  ;;  %v3185_v10 = vpop.f32.mrf.mxu1 }
 0x192   :  { %v4687_v2 = vadd.f32 %v1240_v33, %v844_v63  ;;  %v859_v37 = vadd.f32 %v3185_v10, %v3123_v23 }
 0x193   :  { %v3247_v52 = vpop.f32.mrf.mxu0  ;;  %v853_v18 = vpop.f32.mrf.mxu1 }
 0x194   :  { %v4689_v45 = vadd.f32 %v3247_v52, %v859_v37  ;;  %v854_v28 = vadd.f32 %v853_v18, %v529_v58  ;;  %v2521_v58 = vld [vmem:[%s4976_s4 + $0x10] sm:$0xff] }
 0x195   :  { %v1250_v59 = vpop.f32.mrf.mxu0  ;;  %v3188_v29 = vpop.f32.mrf.mxu1  ;;  %3414 = vmatprep.subr.mxu1 %v2521_v58 }
 0x196   :  { %v4691_v14 = vadd.f32 %v1250_v59, %v854_v28  ;;  %v869_v46 = vadd.f32 %v3188_v29, %v3126_v36  ;;  %3415 = vmatpush3.msra.mxu1 %v2521_v58 }
 0x197   :  { %v3250_v50 = vpop.f32.mrf.mxu0  ;;  %v863_v53 = vpop.f32.mrf.mxu1 }
 0x198   :  { %v4693_v38 = vadd.f32 %v3250_v50, %v869_v46  ;;  %v864_v40 = vadd.f32 %v863_v53, %v4634_v26 }
 0x199   :  { %v1260_v22 = vpop.f32.mrf.mxu0  ;;  %v3191_v56 = vpop.f32.mrf.mxu1 }
 0x19a   :  { %v4696_v23 = vadd.f32 %v1260_v22, %v864_v40  ;;  %v879_v39 = vadd.f32 %v3191_v56, %v4638_v9 }
 0x19b   :  { %v3253_v61 = vpop.f32.mrf.mxu0  ;;  %v873_v24 = vpop.f32.mrf.mxu1 }
 0x19c   :  { %v4702_v36 = vadd.f32 %v3253_v61, %v879_v39  ;;  %v874_v13 = vadd.f32 %v873_v24, %v4645_v6 }
 0x19d   :  { %v1270_v43 = vpop.f32.mrf.mxu0  ;;  %v3194_v19 = vpop.f32.mrf.mxu1 }
 0x19e   :  { %v4705_v49 = vadd.f32 %v1270_v43, %v874_v13  ;;  %v889_v27 = vadd.f32 %v3194_v19, %v4649_v32 }
 0x19f   :  { %v3256_v26 = vpop.f32.mrf.mxu0  ;;  %v883_v42 = vpop.f32.mrf.mxu1 }
 0x1a0   :  { %v4708_v7 = vadd.f32 %v3256_v26, %v889_v27  ;;  %v884_v31 = vadd.f32 %v883_v42, %v4653_v57 }
 0x1a1   :  { %v1280_v9 = vpop.f32.mrf.mxu0  ;;  %v3197_v34 = vpop.f32.mrf.mxu1 }
 0x1a2   :  { %v4711_v33 = vadd.f32 %v1280_v9, %v884_v31  ;;  %v899_v63 = vadd.f32 %v3197_v34, %v4657_v17  ;;  %v2520_v17 = vld [vmem:[%s4976_s4 + $0x8] sm:$0xff] }
 0x1a3   :  { %v3259_v41 = vpop.f32.mrf.mxu0  ;;  %v893_v6 = vpop.f32.mrf.mxu1  ;;  %3416 = vmatprep.subr.mxu1 %v2520_v17 }
 0x1a4   :  { %v4714_v10 = vadd.f32 %v3259_v41, %v899_v63  ;;  %v894_v52 = vadd.f32 %v893_v6, %v4661_v21  ;;  %v2519_v21 = vld [vmem:[%s4976_s4] sm:$0xff]  ;;  %3417 = vmatpush3.msra.mxu1 %v2520_v17 }
 0x1a5   :  { %v1290_v51 = vpop.f32.mrf.mxu0  ;;  %v3200_v37 = vpop.f32.mrf.mxu1  ;;  %3418 = vmatprep.subr.mxu1 %v2519_v21 }
 0x1a6   :  { %v4717_v18 = vadd.f32 %v1290_v51, %v894_v52  ;;  %v909_v59 = vadd.f32 %v3200_v37, %v4663_v30  ;;  %3419 = vmatpush3.msra.mxu1 %v2519_v21 }
 0x1a7   :  { %v3262_v32 = vpop.f32.mrf.mxu0  ;;  %v903_v28 = vpop.f32.mrf.mxu1 }
 0x1a8   :  { %v4720_v29 = vadd.f32 %v3262_v32, %v909_v59  ;;  %v904_v50 = vadd.f32 %v903_v28, %v4667_v54 }
 0x1a9   :  { %v1300_v57 = vpop.f32.mrf.mxu0  ;;  %v3203_v46 = vpop.f32.mrf.mxu1 }
 0x1aa   :  { %v4729_v22 = vadd.f32 %v1300_v57, %v904_v50  ;;  %v919_v30 = vadd.f32 %v3203_v46, %v4622_v16 }
 0x1ab   :  { %v3265_v53 = vpop.f32.mrf.mxu0  ;;  %v913_v40 = vpop.f32.mrf.mxu1 }
 0x1ac   :  { %v4732_v54 = vadd.f32 %v3265_v53, %v919_v30  ;;  %v914_v61 = vadd.f32 %v913_v40, %v4624_v60 }
 0x1ad   :  { %v1310_v56 = vpop.f32.mrf.mxu0  ;;  %v3206_v39 = vpop.f32.mrf.mxu1 }
 0x1ae   :  { %v4735_v24 = vadd.f32 %v1310_v56, %v914_v61  ;;  %v929_v43 = vadd.f32 %v3206_v39, %v4626_v44 }
 0x1af   :  { %v3268_v58 = vpop.f32.mrf.mxu0  ;;  %v923_v13 = vpop.f32.mrf.mxu1 }
 0x1b0   :  { %v4738_v26 = vadd.f32 %v3268_v58, %v929_v43  ;;  %v924_v16 = vadd.f32 %v923_v13, %v4628_v47 }
 0x1b1   :  { %v1320_v19 = vpop.f32.mrf.mxu0  ;;  %v3209_v27 = vpop.f32.mrf.mxu1 }
 0x1b2   :  { %v4741_v9 = vadd.f32 %v1320_v19, %v924_v16  ;;  %v939_v31 = vadd.f32 %v3209_v27, %v4630_v12 }
 0x1b3   :  { %v3271_v42 = vpop.f32.mrf.mxu0  ;;  %v933_v60 = vpop.f32.mrf.mxu1 }
 0x1b4   :  { %v4744_v41 = vadd.f32 %v3271_v42, %v939_v31  ;;  %v934_v63 = vadd.f32 %v933_v60, %v4632_v20 }
 0x1b5   :  { %v1330_v34 = vpop.f32.mrf.mxu0  ;;  %v3212_v6 = vpop.f32.mrf.mxu1 }
 0x1b6   :  { %v4747_v51 = vadd.f32 %v1330_v34, %v934_v63  ;;  %v949_v52 = vadd.f32 %v3212_v6, %v4636_v35 }
 0x1b7   :  { %v3274_v44 = vpop.f32.mrf.mxu0  ;;  %v943_v37 = vpop.f32.mrf.mxu1 }
 0x1b8   :  { %v4750_v32 = vadd.f32 %v3274_v44, %v949_v52  ;;  %v944_v59 = vadd.f32 %v943_v37, %v4640_v4 }
 0x1b9   :  { %v1340_v47 = vpop.f32.mrf.mxu0  ;;  %v3215_v28 = vpop.f32.mrf.mxu1 }
 0x1ba   :  { %v4753_v57 = vadd.f32 %v1340_v47, %v944_v59  ;;  %v959_v50 = vadd.f32 %v3215_v28, %v4647_v8 }
 0x1bb   :  { %v3277_v12 = vpop.f32.mrf.mxu0  ;;  %v953_v17 = vpop.f32.mrf.mxu1 }
 0x1bc   :  { %v4756_v21 = vadd.f32 %v3277_v12, %v959_v50  ;;  %v954_v46 = vadd.f32 %v953_v17, %v4651_v55  ;;  %v4770_v55 = vld [vmem:[%s4974_s2] ss:$0 sm:$0xff] }
 0x1bd   :  { %v1350_v20 = vpop.f32.mrf.mxu0  ;;  %v3218_v53 = vpop.f32.mrf.mxu1 }
 0x1be   :  { %v4759_v30 = vadd.f32 %v1350_v20, %v954_v46  ;;  %v969_v40 = vadd.f32 %v3218_v53, %v4655_v3 }
 0x1bf   :  { %v3280_v35 = vpop.f32.mrf.mxu0  ;;  %v963_v56 = vpop.f32.mrf.mxu1 }
 0x1c0   :  { %v4762_v61 = vadd.f32 %v3280_v35, %v969_v40  ;;  %v964_v12 = vadd.f32 %v963_v56, %v4659_v5 }
 0x1c1   :  { %v1360_v4 = vpop.f32.mrf.mxu0  ;;  %v3221_v39 = vpop.f32.mrf.mxu1 }
 0x1c2   :  { %v979_v40 = vadd.f32 %v3221_v39, %v4665_v48 }
 0x1c3   :  { %v3283_v58 = vpop.f32.mrf.mxu0  ;;  %v973_v43 = vpop.f32.mrf.mxu1 }
 0x1c5   :  { %v4764_v8 = vpop.f32.mrf.mxu0  ;;  %v3300_v13 = vpop.f32.mrf.mxu1 }
 0x1c6   :  { %v1809_v16 = vadd.f32 %v3300_v13, %v4674_v1  ;;  %v4778_v1 = vld [vmem:[%s4975_s3 + $0x8] sm:$0xff] }
 0x1c7   :  { %v3362_v19 = vpop.f32.mrf.mxu0  ;;  %v1649_v27 = vpop.f32.mrf.mxu1 }
 0x1c8   :  { %v2238_v42 = vadd.f32 %v3362_v19, %v1809_v16  ;;  %v1808_v31 = vadd.f32 %v1649_v27, %v4676_v25  ;;  %v4794_v27 = vadd.f32 %v1360_v4, %v964_v12 }
 0x1c9   :  { %v2078_v3 = vpop.f32.mrf.mxu0  ;;  %v3303_v60 = vpop.f32.mrf.mxu1 }
 0x1ca   :  { %v2277_v63 = vadd.f32 %v4770_v55, %v2238_v42  ;;  %v2237_v6 = vadd.f32 %v2078_v3, %v1808_v31  ;;  %v1811_v44 = vadd.f32 %v3303_v60, %v4678_v11  ;;  %v4786_v11 = vld [vmem:[%s4975_s3] sm:$0xff] }
 0x1cb   :  { %v3365_v34 = vpop.f32.mrf.mxu0  ;;  %v1659_v52 = vpop.f32.mrf.mxu1 }
 0x1cc   :  { %v2309_v47 = vmax.f32 %v2277_v63, 0.0  ;;  %v2276_v59 = vadd.f32 %v4770_v55, %v2237_v6  ;;  %v2240_v28 = vadd.f32 %v3365_v34, %v1811_v44  ;;  %v1810_v25 = vadd.f32 %v1659_v52, %v4680_v15 }
 0x1cd   :  { %v2088_v37 = vpop.f32.mrf.mxu0  ;;  %v3306_v50 = vpop.f32.mrf.mxu1  ;;  %v4801_v6 = vadd.f32 %v3283_v58, %v979_v40 }
 0x1ce   :  { %v2343_v20 = vmul.f32 %v4778_v1, %v2309_v47  ;;  %v2308_v46 = vmax.f32 %v2276_v59, 0.0  ;;  %v2279_v53 = vadd.f32 %v4770_v55, %v2240_v28  ;;  %v2239_v35 = vadd.f32 %v2088_v37, %v1810_v25 }
 0x1cf   :  { %v3368_v17 = vpop.f32.mrf.mxu0  ;;  %v1813_v15 = vadd.f32 %v3306_v50, %v4682_v0  ;;  %v1669_v13 = vpop.f32.mrf.mxu1  ;;  %v974_v59 = vadd.f32 %v973_v43, %v4669_v62 }
 0x1d0   :  { %v2342_v56 = vmul.f32 %v4786_v11, %v2308_v46  ;;  %v2311_v19 = vmax.f32 %v2279_v53, 0.0  ;;  %v2278_v16 = vadd.f32 %v4770_v55, %v2239_v35  ;;  %v2376_v3 = vsel %vm2374_vm0, %v2343_v20, -inf }
 0x1d1   :  { %v2098_v5 = vpop.f32.mrf.mxu0  ;;  %v2242_v42 = vadd.f32 %v3368_v17, %v1813_v15  ;;  %v1812_v31 = vadd.f32 %v1669_v13, %v4687_v2  ;;  %v3309_v60 = vpop.f32.mrf.mxu1 }
 0x1d2   :  { %v2375_v48 = vsel %vm2374_vm0, %v2342_v56, -inf  ;;  %v2345_v0 = vmul.f32 %v4778_v1, %v2311_v19  ;;  %v2310_v39 = vmax.f32 %v2278_v16, 0.0  ;;  %v1815_v63 = vadd.f32 %v3309_v60, %v4689_v45 }
 0x1d3   :  { %v3371_v34 = vpop.f32.mrf.mxu0  ;;  %v2377_v44 = vmax.f32 %v2375_v48, %v2376_v3  ;;  %v2281_v4 = vadd.f32 %v4770_v55, %v2242_v42  ;;  %v2241_v52 = vadd.f32 %v2098_v5, %v1812_v31  ;;  %v1679_v37 = vpop.f32.mrf.mxu1 }
 0x1d4   :  { %v2344_v2 = vmul.f32 %v4786_v11, %v2310_v39  ;;  %v2244_v28 = vadd.f32 %v3371_v34, %v1815_v63  ;;  %v1814_v25 = vadd.f32 %v1679_v37, %v4691_v14  ;;  %v2385_v50 = vsel %vm2374_vm0, %v2345_v0, -inf }
 0x1d5   :  { %v2108_v47 = vpop.f32.mrf.mxu0  ;;  %v2378_v12 = vrot.slane %v2377_v44, 4  ;;  %v2313_v17 = vmax.f32 %v2281_v4, 0.0  ;;  %v2280_v45 = vadd.f32 %v4770_v55, %v2241_v52  ;;  %v3312_v58 = vpop.f32.mrf.mxu1 }
 0x1d6   :  { %v2384_v46 = vsel %vm2374_vm0, %v2344_v2, -inf  ;;  %v2283_v53 = vadd.f32 %v4770_v55, %v2244_v28  ;;  %v2243_v35 = vadd.f32 %v2108_v47, %v1814_v25  ;;  %v1817_v62 = vadd.f32 %v3312_v58, %v4693_v38 }
 0x1d7   :  { %v3374_v20 = vpop.f32.mrf.mxu0  ;;  %v2379_v43 = vmax.f32 %v2377_v44, %v2378_v12  ;;  %v2386_v40 = vmax.f32 %v2384_v46, %v2385_v50  ;;  %v2347_v15 = vmul.f32 %v4778_v1, %v2313_v17  ;;  %v2312_v14 = vmax.f32 %v2280_v45, 0.0  ;;  %v1689_v13 = vpop.f32.mrf.mxu1 }
 0x1d8   :  { %v2315_v56 = vmax.f32 %v2283_v53, 0.0  ;;  %v2282_v19 = vadd.f32 %v4770_v55, %v2243_v35  ;;  %v2246_v16 = vadd.f32 %v3374_v20, %v1817_v62  ;;  %v1816_v3 = vadd.f32 %v1689_v13, %v4696_v23 }
 0x1d9   :  { %v2118_v5 = vpop.f32.mrf.mxu0  ;;  %v2380_v42 = vrot.slane %v2379_v43, 2  ;;  %v2387_v31 = vrot.slane %v2386_v40, 4  ;;  %v2394_v60 = vsel %vm2374_vm0, %v2347_v15, -inf  ;;  %v2346_v34 = vmul.f32 %v4786_v11, %v2312_v14  ;;  %v3315_v38 = vpop.f32.mrf.mxu1 }
 0x1da   :  { %v2349_v0 = vmul.f32 %v4778_v1, %v2315_v56  ;;  %v2314_v39 = vmax.f32 %v2282_v19, 0.0  ;;  %v2285_v63 = vadd.f32 %v4770_v55, %v2246_v16  ;;  %v2245_v44 = vadd.f32 %v2118_v5, %v1816_v3 }
 0x1db   :  { %v3377_v48 = vpop.f32.mrf.mxu0  ;;  %v2381_v4 = vmax.f32 %v2379_v43, %v2380_v42  ;;  %v2388_v52 = vmax.f32 %v2386_v40, %v2387_v31  ;;  %v2393_v37 = vsel %vm2374_vm0, %v2346_v34, -inf  ;;  %v1819_v23 = vadd.f32 %v3315_v38, %v4702_v36  ;;  %v1699_v47 = vpop.f32.mrf.mxu1 }
 0x1dc   :  { %v4822_v28 = vadd.f32 %v4764_v8, %v974_v59  ;;  %v2395_v25 = vmax.f32 %v2393_v37, %v2394_v60  ;;  %v2348_v12 = vmul.f32 %v4786_v11, %v2314_v39  ;;  %v2317_v50 = vmax.f32 %v2285_v63, 0.0 }
 0x1dd   :  { %v2128_v2 = vpop.f32.mrf.mxu0  ;;  %v2382_v17 = vrot.slane %v2381_v4, 1  ;;  %v2389_v45 = vrot.slane %v2388_v52, 2  ;;  %v2284_v58 = vadd.f32 %v4770_v55, %v2245_v44  ;;  %v2248_v20 = vadd.f32 %v3377_v48, %v1819_v23  ;;  %v3318_v46 = vpop.f32.mrf.mxu1 }
 0x1de   :  { %v2396_v35 = vrot.slane %v2395_v25, 4  ;;  %v2403_v62 = vsel %vm2374_vm0, %v2349_v0, -inf  ;;  %v2402_v36 = vsel %vm2374_vm0, %v2348_v12, -inf  ;;  %v1818_v43 = vadd.f32 %v1699_v47, %v4705_v49 }
 0x1df   :  { %v3380_v53 = vpop.f32.mrf.mxu0  ;;  %v2390_v8 = vmax.f32 %v2388_v52, %v2389_v45  ;;  %v2404_v59 = vmax.f32 %v2402_v36, %v2403_v62  ;;  %v2351_v40 = vmul.f32 %v4778_v1, %v2317_v50  ;;  %v2316_v15 = vmax.f32 %v2284_v58, 0.0  ;;  %v1709_v14 = vpop.f32.mrf.mxu1 }
 0x1e0   :  { %v4830_v5 = vmax.f32 %v2381_v4, %v2382_v17  ;;  %v2397_v56 = vmax.f32 %v2395_v25, %v2396_v35  ;;  %v2287_v19 = vadd.f32 %v4770_v55, %v2248_v20  ;;  %v2247_v16 = vadd.f32 %v2128_v2, %v1818_v43 }
 0x1e1   :  { %v2138_v13 = vpop.f32.mrf.mxu0  ;;  %v2391_v3 = vrot.slane %v2390_v8, 1  ;;  %v2405_v42 = vrot.slane %v2404_v59, 4  ;;  %v2350_v31 = vmul.f32 %v4786_v11, %v2316_v15  ;;  %v1821_v60 = vadd.f32 %v3318_v46, %v4708_v7  ;;  %v3321_v49 = vpop.f32.mrf.mxu1 }
 0x1e2   :  { %v2398_v38 = vrot.slane %v2397_v56, 2  ;;  %v2319_v48 = vmax.f32 %v2287_v19, 0.0  ;;  %v2286_v0 = vadd.f32 %v4770_v55, %v2247_v16  ;;  %v1820_v39 = vadd.f32 %v1709_v14, %v4711_v33 }
 0x1e3   :  { %v3383_v34 = vpop.f32.mrf.mxu0  ;;  %v2406_v63 = vmax.f32 %v2404_v59, %v2405_v42  ;;  %v2412_v44 = vsel %vm2374_vm0, %v2351_v40, -inf  ;;  %v2411_v4 = vsel %vm2374_vm0, %v2350_v31, -inf  ;;  %v2250_v52 = vadd.f32 %v3380_v53, %v1821_v60  ;;  %v1719_v37 = vpop.f32.mrf.mxu1 }
 0x1e4   :  { %v2399_v47 = vmax.f32 %v2397_v56, %v2398_v38  ;;  %v2413_v2 = vmax.f32 %v2411_v4, %v2412_v44  ;;  %v2353_v7 = vmul.f32 %v4778_v1, %v2319_v48  ;;  %v2318_v25 = vmax.f32 %v2286_v0, 0.0 }
 0x1e5   :  { %v2148_v23 = vpop.f32.mrf.mxu0  ;;  %v2407_v12 = vrot.slane %v2406_v63, 2  ;;  %v2289_v50 = vadd.f32 %v4770_v55, %v2250_v52  ;;  %v2249_v17 = vadd.f32 %v2138_v13, %v1820_v39  ;;  %v1823_v45 = vadd.f32 %v3321_v49, %v4714_v10  ;;  %v3324_v33 = vpop.f32.mrf.mxu1 }
 0x1e6   :  { %v4842_v20 = vmax.f32 %v2390_v8, %v2391_v3  ;;  %v2400_v46 = vrot.slane %v2399_v47, 1  ;;  %v2414_v35 = vrot.slane %v2413_v2, 4  ;;  %v2352_v53 = vmul.f32 %v4786_v11, %v2318_v25 }
 0x1e7   :  { %v3386_v58 = vpop.f32.mrf.mxu0  ;;  %v2408_v62 = vmax.f32 %v2406_v63, %v2407_v12  ;;  %v2321_v36 = vmax.f32 %v2289_v50, 0.0  ;;  %v2288_v43 = vadd.f32 %v4770_v55, %v2249_v17  ;;  %v2252_v59 = vadd.f32 %v3383_v34, %v1823_v45  ;;  %v1729_v40 = vpop.f32.mrf.mxu1 }
 0x1e8   :  { %v2415_v14 = vmax.f32 %v2413_v2, %v2414_v35  ;;  %v2421_v13 = vsel %vm2374_vm0, %v2353_v7, -inf  ;;  %v2420_v10 = vsel %vm2374_vm0, %v2352_v53, -inf  ;;  %v1822_v56 = vadd.f32 %v1719_v37, %v4717_v18 }
 0x1e9   :  { %v2158_v15 = vpop.f32.mrf.mxu0  ;;  %v4849_v8 = vmax.f32 %v2399_v47, %v2400_v46  ;;  %v2422_v19 = vmax.f32 %v2420_v10, %v2421_v13  ;;  %v2355_v16 = vmul.f32 %v4778_v1, %v2321_v36  ;;  %v2320_v3 = vmax.f32 %v2288_v43, 0.0  ;;  %v3327_v42 = vpop.f32.mrf.mxu1 }
 0x1ea   :  { %v2416_v60 = vrot.slane %v2415_v14, 2  ;;  %v2291_v49 = vadd.f32 %v4770_v55, %v2252_v59  ;;  %v2251_v34 = vadd.f32 %v2148_v23, %v1822_v56  ;;  %v1825_v38 = vadd.f32 %v3324_v33, %v4720_v29 }
 0x1eb   :  { %v3389_v31 = vpop.f32.mrf.mxu0  ;;  %v2409_v48 = vrot.slane %v2408_v62, 1  ;;  %v2423_v0 = vrot.slane %v2422_v19, 4  ;;  %v2430_v39 = vsel %vm2374_vm0, %v2355_v16, -inf  ;;  %v2354_v18 = vmul.f32 %v4786_v11, %v2320_v3  ;;  %v1739_v63 = vpop.f32.mrf.mxu1 }
 0x1ec   :  { %v2417_v4 = vmax.f32 %v2415_v14, %v2416_v60  ;;  %v2323_v52 = vmax.f32 %v2291_v49, 0.0  ;;  %v2290_v37 = vadd.f32 %v4770_v55, %v2251_v34  ;;  %v2254_v47 = vadd.f32 %v3386_v58, %v1825_v38 }
 0x1ed   :  { %v2168_v44 = vpop.f32.mrf.mxu0  ;;  %v2424_v2 = vmax.f32 %v2422_v19, %v2423_v0  ;;  %v2429_v7 = vsel %vm2374_vm0, %v2354_v18, -inf  ;;  %v1824_v23 = vadd.f32 %v1729_v40, %v4729_v22  ;;  %v1827_v29 = vadd.f32 %v3327_v42, %v4732_v54  ;;  %v3330_v25 = vpop.f32.mrf.mxu1 }
 0x1ee   :  { %v2418_v50 = vrot.slane %v2417_v4, 1  ;;  %v2431_v17 = vmax.f32 %v2429_v7, %v2430_v39  ;;  %v2357_v45 = vmul.f32 %v4778_v1, %v2323_v52  ;;  %v2322_v33 = vmax.f32 %v2290_v37, 0.0 }
 0x1ef   :  { %v3392_v12 = vpop.f32.mrf.mxu0  ;;  %v2425_v46 = vrot.slane %v2424_v2, 2  ;;  %v2293_v35 = vadd.f32 %v4770_v55, %v2254_v47  ;;  %v2253_v53 = vadd.f32 %v2158_v15, %v1824_v23  ;;  %v2256_v36 = vadd.f32 %v3389_v31, %v1827_v29  ;;  %v1749_v58 = vpop.f32.mrf.mxu1 }
 0x1f0   :  { %v4862_v59 = vmax.f32 %v2408_v62, %v2409_v48  ;;  %v2432_v14 = vrot.slane %v2431_v17, 4  ;;  %v2439_v22 = vsel %vm2374_vm0, %v2357_v45, -inf  ;;  %v2356_v54 = vmul.f32 %v4786_v11, %v2322_v33 }
 0x1f1   :  { %v2178_v43 = vpop.f32.mrf.mxu0  ;;  %v4866_v40 = vmax.f32 %v2424_v2, %v2425_v46  ;;  %v2325_v13 = vmax.f32 %v2293_v35, 0.0  ;;  %v2292_v10 = vadd.f32 %v4770_v55, %v2253_v53  ;;  %v2295_v56 = vadd.f32 %v4770_v55, %v2256_v36  ;;  %v3333_v19 = vpop.f32.mrf.mxu1 }
 0x1f2   :  { %v2433_v15 = vmax.f32 %v2431_v17, %v2432_v14  ;;  %v2438_v3 = vsel %vm2374_vm0, %v2356_v54, -inf  ;;  %v1826_v62 = vadd.f32 %v1739_v63, %v4735_v24  ;;  %v1829_v42 = vadd.f32 %v3330_v25, %v4738_v26 }
 0x1f3   :  { %v3395_v16 = vpop.f32.mrf.mxu0  ;;  %v4873_v31 = vmax.f32 %v2417_v4, %v2418_v50  ;;  %v4875_v60 = vmax.f32 %v2438_v3, %v2439_v22  ;;  %v2359_v49 = vmul.f32 %v4778_v1, %v2325_v13  ;;  %v2324_v34 = vmax.f32 %v2292_v10, 0.0  ;;  %v1759_v38 = vpop.f32.mrf.mxu1 }
 0x1f4   :  { %v2434_v0 = vrot.slane %v2433_v15, 2  ;;  %v2327_v39 = vmax.f32 %v2295_v56, 0.0  ;;  %v2255_v18 = vadd.f32 %v2168_v44, %v1826_v62  ;;  %v2258_v52 = vadd.f32 %v3392_v12, %v1829_v42 }
 0x1f5   :  { %v2188_v48 = vpop.f32.mrf.mxu0  ;;  %v2427_v37 = vrot.slane %v4866_v40, 1  ;;  %v2441_v47 = vrot.slane %v4875_v60, 4  ;;  %v2358_v24 = vmul.f32 %v4786_v11, %v2324_v34  ;;  %v1828_v26 = vadd.f32 %v1749_v58, %v4741_v9  ;;  %v3336_v63 = vpop.f32.mrf.mxu1 }
 0x1f6   :  { %v2448_v4 = vsel %vm2374_vm0, %v2359_v49, -inf  ;;  %v2361_v2 = vmul.f32 %v4778_v1, %v2327_v39  ;;  %v2294_v7 = vadd.f32 %v4770_v55, %v2255_v18  ;;  %v2297_v23 = vadd.f32 %v4770_v55, %v2258_v52 }
 0x1f7   :  { %v4886_v29 = vmax.f32 %v2433_v15, %v2434_v0  ;;  %v2447_v44 = vsel %vm2374_vm0, %v2358_v24, -inf  ;;  %v2257_v25 = vadd.f32 %v2178_v43, %v1828_v26  ;;  %v1831_v12 = vadd.f32 %v3333_v19, %v4744_v41  ;;  %v3398_v50 = vpop.f32.mrf.mxu0  ;;  %v1769_v17 = vpop.f32.mrf.mxu1 }
 0x1f8   :  { %v2449_v45 = vmax.f32 %v2447_v44, %v2448_v4  ;;  %v2457_v9 = vsel %vm2374_vm0, %v2361_v2, -inf  ;;  %v2326_v33 = vmax.f32 %v2294_v7, 0.0  ;;  %v2329_v46 = vmax.f32 %v2297_v23, 0.0 }
 0x1f9   :  { %v2296_v35 = vadd.f32 %v4770_v55, %v2257_v25  ;;  %v2260_v53 = vadd.f32 %v3395_v16, %v1831_v12  ;;  %v1830_v36 = vadd.f32 %v1759_v38, %v4747_v51  ;;  %v1833_v58 = vadd.f32 %v3336_v63, %v4750_v32  ;;  %v2198_v19 = vpop.f32.mrf.mxu0  ;;  %v3339_v15 = vpop.f32.mrf.mxu1 }
 0x1fa   :  { %v2450_v14 = vrot.slane %v2449_v45, 4  ;;  %v2360_v22 = vmul.f32 %v4786_v11, %v2326_v33  ;;  %v2363_v43 = vmul.f32 %v4778_v1, %v2329_v46  ;;  %v1832_v41 = vadd.f32 %v1769_v17, %v4753_v57 }
 0x1fb   :  { %v2328_v54 = vmax.f32 %v2296_v35, 0.0  ;;  %v2299_v13 = vadd.f32 %v4770_v55, %v2260_v53  ;;  %v2259_v10 = vadd.f32 %v2188_v48, %v1830_v36  ;;  %v2262_v56 = vadd.f32 %v3398_v50, %v1833_v58  ;;  %v3401_v26 = vpop.f32.mrf.mxu0  ;;  %v1779_v63 = vpop.f32.mrf.mxu1 }
 0x1fc   :  { %v2451_v3 = vmax.f32 %v2449_v45, %v2450_v14  ;;  %v2456_v16 = vsel %vm2374_vm0, %v2360_v22, -inf  ;;  %v2466_v51 = vsel %vm2374_vm0, %v2363_v43, -inf  ;;  %v2261_v32 = vadd.f32 %v2198_v19, %v1832_v41 }
 0x1fd   :  { %v2458_v62 = vmax.f32 %v2456_v16, %v2457_v9  ;;  %v2362_v42 = vmul.f32 %v4786_v11, %v2328_v54  ;;  %v2331_v49 = vmax.f32 %v2299_v13, 0.0  ;;  %v2298_v34 = vadd.f32 %v4770_v55, %v2259_v10  ;;  %v2208_v36 = vpop.f32.mrf.mxu0  ;;  %v3342_v58 = vpop.f32.mrf.mxu1 }
 0x1fe   :  { %v2452_v57 = vrot.slane %v2451_v3, 2  ;;  %v2301_v38 = vadd.f32 %v4770_v55, %v2262_v56  ;;  %v2300_v48 = vadd.f32 %v4770_v55, %v2261_v32  ;;  %v1835_v0 = vadd.f32 %v3339_v15, %v4756_v21 }
 0x1ff   :  { %v2459_v39 = vrot.slane %v2458_v62, 4  ;;  %v2465_v18 = vsel %vm2374_vm0, %v2362_v42, -inf  ;;  %v2365_v52 = vmul.f32 %v4778_v1, %v2331_v49  ;;  %v2330_v24 = vmax.f32 %v2298_v34, 0.0  ;;  %v3404_v32 = vpop.f32.mrf.mxu0 }
 0x200   :  { %v2453_v4 = vmax.f32 %v2451_v3, %v2452_v57  ;;  %v2467_v2 = vmax.f32 %v2465_v18, %v2466_v51  ;;  %v2333_v7 = vmax.f32 %v2301_v38, 0.0  ;;  %v2332_v23 = vmax.f32 %v2300_v48, 0.0  ;;  %v1789_v57 = vpop.f32.mrf.mxu1 }
 0x201   :  { %v2460_v44 = vmax.f32 %v2458_v62, %v2459_v39  ;;  %v2475_v25 = vsel %vm2374_vm0, %v2365_v52, -inf  ;;  %v2364_v12 = vmul.f32 %v4786_v11, %v2330_v24  ;;  %v2264_v50 = vadd.f32 %v3401_v26, %v1835_v0 }
 0x202   :  { %v2454_v17 = vrot.slane %v2453_v4, 1  ;;  %v2468_v21 = vrot.slane %v2467_v2, 4  ;;  %v2367_v45 = vmul.f32 %v4778_v1, %v2333_v7  ;;  %v2366_v9 = vmul.f32 %v4786_v11, %v2332_v23 }
 0x203   :  { %v2461_v33 = vrot.slane %v2460_v44, 2  ;;  %v2474_v46 = vsel %vm2374_vm0, %v2364_v12, -inf  ;;  %v2303_v35 = vadd.f32 %v4770_v55, %v2264_v50  ;;  %v1834_v53 = vadd.f32 %v1779_v63, %v4759_v30 }
 0x204   :  { %v2442_v14 = vmax.f32 %v4875_v60, %v2441_v47  ;;  %v2469_v22 = vmax.f32 %v2467_v2, %v2468_v21  ;;  %v2476_v43 = vmax.f32 %v2474_v46, %v2475_v25  ;;  %v2484_v41 = vsel %vm2374_vm0, %v2367_v45, -inf  ;;  %v3345_v25 = vpop.f32.mrf.mxu1 }
 0x205   :  { %v2462_v54 = vmax.f32 %v2460_v44, %v2461_v33  ;;  %v2483_v13 = vsel %vm2374_vm0, %v2366_v9, -inf  ;;  %v2335_v10 = vmax.f32 %v2303_v35, 0.0  ;;  %v2263_v56 = vadd.f32 %v2208_v36, %v1834_v53 }
 0x206   :  { %v2470_v19 = vrot.slane %v2469_v22, 2  ;;  %v2477_v15 = vrot.slane %v2476_v43, 4  ;;  %v2485_v3 = vmax.f32 %v2483_v13, %v2484_v41  ;;  %v1837_v30 = vadd.f32 %v3342_v58, %v4762_v61 }
 0x207   :  { %v2455_v16 = vmax.f32 %v2453_v4, %v2454_v17  ;;  %v2463_v51 = vrot.slane %v2462_v54, 1  ;;  %v2369_v60 = vmul.f32 %v4778_v1, %v2335_v10  ;;  %v2302_v47 = vadd.f32 %v4770_v55, %v2263_v56 }
 0x208   :  { %v2471_v62 = vmax.f32 %v2469_v22, %v2470_v19  ;;  %v2478_v42 = vmax.f32 %v2476_v43, %v2477_v15  ;;  %v2486_v49 = vrot.slane %v2485_v3, 4  ;;  %v2266_v34 = vadd.f32 %v3404_v32, %v1837_v30 }
 0x209   :  { %v2464_v38 = vmax.f32 %v2462_v54, %v2463_v51  ;;  %v2334_v48 = vmax.f32 %v2302_v47, 0.0  ;;  %v2428_v61 = vmax.f32 %v4866_v40, %v2427_v37  ;;  %v2436_v0 = vrot.slane %v4886_v29, 1  ;;  %v2218_v37 = vpop.f32.mrf.mxu0 }
 0x20a   :  { %v2472_v39 = vrot.slane %v2471_v62, 1  ;;  %v2479_v18 = vrot.slane %v2478_v42, 2  ;;  %v2487_v52 = vmax.f32 %v2485_v3, %v2486_v49  ;;  %v2305_v24 = vadd.f32 %v4770_v55, %v2266_v34 }
 0x20b   :  { %v2562_v26 = vsel %vm2548_vm5, %v2464_v38, %v2455_v16  ;;  %v2493_v63 = vsel %vm2374_vm0, %v2369_v60, -inf  ;;  %v2368_v4 = vmul.f32 %v4786_v11, %v2334_v48  ;;  %v2443_v2 = vrot.slane %v2442_v14, 2 }
 0x20c   :  { %v2473_v7 = vmax.f32 %v2471_v62, %v2472_v39  ;;  %v2480_v23 = vmax.f32 %v2478_v42, %v2479_v18  ;;  %v2488_v44 = vrot.slane %v2487_v52, 2  ;;  %v2337_v40 = vmax.f32 %v2305_v24, 0.0 }
 0x20d   :  { %v2492_v12 = vsel %vm2374_vm0, %v2368_v4, -inf  ;;  %v2444_v50 = vmax.f32 %v2442_v14, %v2443_v2  ;;  %v2549_v17 = vsel %vm2548_vm5, %v4842_v20, %v4830_v5  ;;  %v1836_v21 = vadd.f32 %v1789_v57, %v4794_v27  ;;  %v3407_v5 = vpop.f32.mrf.mxu0  ;;  %v1799_v20 = vpop.f32.mrf.mxu1 }
 0x20e   :  { %v2481_v45 = vrot.slane %v2480_v23, 1  ;;  %v2489_v9 = vmax.f32 %v2487_v52, %v2488_v44  ;;  %v2494_v33 = vmax.f32 %v2492_v12, %v2493_v63  ;;  %v2437_v46 = vmax.f32 %v4886_v29, %v2436_v0 }
 0x20f   :  { %v2445_v35 = vrot.slane %v2444_v50, 1  ;;  %v2551_v53 = vsel %vm2550_vm6, %v4849_v8, %v2549_v17  ;;  %v2563_v36 = vsel %vm2550_vm6, %v2473_v7, %v2562_v26  ;;  %v2265_v58 = vadd.f32 %v2218_v37, %v1836_v21  ;;  %v2228_v47 = vpop.f32.mrf.mxu0  ;;  %v2892_v21 = vld [vmem:[%s4977_s5] ss:$0 sm:$0xff] }
 0x210   :  { %v2482_v22 = vmax.f32 %v2480_v23, %v2481_v45  ;;  %v2490_v14 = vrot.slane %v2489_v9, 1  ;;  %v2495_v43 = vrot.slane %v2494_v33, 4  ;;  %v2371_v41 = vmul.f32 %v4778_v1, %v2337_v40 }
 0x211   :  { %v2446_v27 = vmax.f32 %v2444_v50, %v2445_v35  ;;  %v2553_v54 = vsel %vm2552_vm11, %v4862_v59, %v2551_v53  ;;  %v2304_v29 = vadd.f32 %v4770_v55, %v2265_v58  ;;  %v1839_v13 = vadd.f32 %v3345_v25, %v4801_v6 }
 0x212   :  { %v2491_v10 = vmax.f32 %v2489_v9, %v2490_v14  ;;  %v2496_v8 = vmax.f32 %v2494_v33, %v2495_v43  ;;  %v2555_v56 = vsel %vm2554_vm14, %v4873_v31, %v2553_v54  ;;  %v2564_v19 = vsel %vm2552_vm11, %v2482_v22, %v2563_v36 }
 0x213   :  { %v2557_v15 = vsel %vm2556_vm15, %v2428_v61, %v2555_v56  ;;  %v2336_v3 = vmax.f32 %v2304_v29, 0.0  ;;  %v2268_v30 = vadd.f32 %v3407_v5, %v1839_v13  ;;  %v1838_v16 = vadd.f32 %v1799_v20, %v4822_v28 }
 0x214   :  { %v2497_v51 = vrot.slane %v2496_v8, 2  ;;  %v2559_v59 = vsel %vm2558_vm1, %v2437_v46, %v2557_v15  ;;  %v2565_v60 = vsel %vm2554_vm14, %v2491_v10, %v2564_v19  ;;  %v2502_v49 = vsel %vm2374_vm0, %v2371_v41, -inf }
 0x215   :  { %v2561_v6 = vsel %vm2560_vm2, %v2446_v27, %v2559_v59  ;;  %v2370_v32 = vmul.f32 %v4786_v11, %v2336_v3  ;;  %v2307_v31 = vadd.f32 %v4770_v55, %v2268_v30  ;;  %v2267_v62 = vadd.f32 %v2228_v47, %v1838_v16 }
 0x216   :  { %v2498_v42 = vmax.f32 %v2496_v8, %v2497_v51  ;;  %3420 = vmatprep.mubr.msk.f32.mxu1 %vm2374_vm0, %v2561_v6 }
 0x217   :  { %v2501_v28 = vsel %vm2374_vm0, %v2370_v32, -inf  ;;  %v2339_v34 = vmax.f32 %v2307_v31, 0.0  ;;  %v2306_v57 = vadd.f32 %v4770_v55, %v2267_v62 }
 0x218   :  { %v2499_v38 = vrot.slane %v2498_v42, 1  ;;  %v2503_v48 = vmax.f32 %v2501_v28, %v2502_v49 }
 0x219   :  { %v2373_v61 = vmul.f32 %v4778_v1, %v2339_v34  ;;  %v2338_v0 = vmax.f32 %v2306_v57, 0.0 }
 0x21a   :  { %v2500_v39 = vmax.f32 %v2498_v42, %v2499_v38  ;;  %v2504_v18 = vrot.slane %v2503_v48, 4 }
 0x21b   :  { %v2372_v52 = vmul.f32 %v4786_v11, %v2338_v0  ;;  %v2511_v63 = vsel %vm2374_vm0, %v2373_v61, -inf }
 0x21c   :  { %v2566_v24 = vsel %vm2556_vm15, %v2500_v39, %v2565_v60  ;;  %v2505_v26 = vmax.f32 %v2503_v48, %v2504_v18 }
 0x21d   :  { %v2510_v4 = vsel %vm2374_vm0, %v2372_v52, -inf }
 0x21e   :  { %v2506_v2 = vrot.slane %v2505_v26, 2  ;;  %v2512_v7 = vmax.f32 %v2510_v4, %v2511_v63 }
 0x220   :  { %v2507_v23 = vmax.f32 %v2505_v26, %v2506_v2  ;;  %v2513_v55 = vrot.slane %v2512_v7, 4 }
 0x222   :  { %v2508_v44 = vrot.slane %v2507_v23, 1  ;;  %v2514_v40 = vmax.f32 %v2512_v7, %v2513_v55 }
 0x224   :  { %v2509_v37 = vmax.f32 %v2507_v23, %v2508_v44  ;;  %v2515_v1 = vrot.slane %v2514_v40, 2 }
 0x226   :  { %v2516_v25 = vmax.f32 %v2514_v40, %v2515_v1  ;;  %v2567_v12 = vsel %vm2558_vm1, %v2509_v37, %v2566_v24 }
 0x228   :  { %v2517_v50 = vrot.slane %v2516_v25, 1 }
 0x22a   :  { %v2518_v11 = vmax.f32 %v2516_v25, %v2517_v50 }
 0x22c   :  { %v2568_v17 = vsel %vm2560_vm2, %v2518_v11, %v2567_v12 }
 0x22d   :  { %3421 = vmatmul.mubr.msk.f32.vlgmr.msra.gmra.mxu1 %vm2374_vm0, %v2568_v17 }
 0x2ed   :  { %v3422_v45 = vpop.f32.mrf.mxu1 }
 0x2ee   :  { %v2645_v9 = vadd.f32 %v3422_v45, %v2892_v21 }
 0x2ef   :  { %v2639_v33 = vpop.f32.mrf.mxu1 }
 0x2f0   :  { %2649 = vst [vmem:[#allocation2 + $0x8] sm:$0xff] %v2645_v9  ;;  %v2640_v46 = vadd.f32 %v2892_v21, %v2639_v33 }
 0x2f2   :  { %2648 = vst [vmem:[#allocation2] sm:$0xff] %v2640_v46 }
 0x2f3   :  { %3455 = shalt.err (!%p3452_p4)
}
 0x2f4   :  { %s3469_s27 = smov 128   ;;  %s3470_s28 = smov 8  }
 0x2f5   :  { %2661 = dma.vmem_to_hbm [thread:$0]  %s2656_s25, 256, %s4978_s6, [#allocation3], %s3469_s27, %s3469_s27, %s3470_s28  }
 0x2f6   :  { %3464 = dma.done.wait [#allocation3], 256  }
 0x2f7   :  { %3465 = vsyncadd [#allocation3], 4294967040 }
 0x2f8   :  { %2665 = vsyncpa [#allocation3], 1 }

</bundles_post_ra>
